<compile_context>
chip_gen: v6e
topology: v6e:2x2x1
jax: 0.10.0
libtpu: 0.0.40
codegen_flags: <defaults>
</compile_context>

<pallas_src>
import math
import functools
import jax
import jax.numpy as jnp
from jax.experimental import pallas as pl
from jax.experimental.pallas import tpu as pltpu

jax.config.update("jax_default_matmul_precision", "highest")

# ---- problem sizes (consistent with the module's forward) ----
B, T, D, H = 2, 8, 32, 4        # batch, seq, embed_dim, num_heads
HD = D // H                     # head_dim = 8
FFN = D                         # ffn_dim defaults to embed_dim
BT = B * T                      # flattened rows = 16
HBT = H * BT                    # head-replicated rows = 64
EPS = 1e-5                      # nn.LayerNorm default eps
NEG_INF = -1e30


def encoder_layer_kernel(
    x_ref,        # (BT, D)       activations, batch folded into rows
    ln_ref,       # (4, D)        rows: ln1_w, ln1_b, ln2_w, ln2_b
    qkv_ref,      # (D+1, 3D)     rows 0..D-1 = [Wq/sqrt(HD)|Wk|Wv]^T, row D = biases
    op_ref,       # (D+1, D)      Wo^T over bias row
    fc1_ref,      # (D+1, FFN)    W1^T over bias row
    fc2_ref,      # (FFN+1, D)    W2^T over bias row
    hmask_ref,    # (HBT, D)      1.0 where lane's head == row's head block, else 0
    bias_ref,     # (BT, HBT)     0 for same-batch (query,key), -1e30 for cross-batch
    bsum_ref,     # (HBT, HBT)    block-diagonal of ones(BT, BT) (per-head-block row sums)
    o_ref,        # (BT, D)
):
    x = x_ref[...]                                    # (BT, D)
    ln = ln_ref[...]                                  # (4, D)

    def layer_norm(v, w, b):
        mu = jnp.mean(v, axis=-1, keepdims=True)
        var = jnp.mean((v - mu) ** 2, axis=-1, keepdims=True)
        return (v - mu) * jax.lax.rsqrt(var + EPS) * w + b

    def linear(v, p_ref, k_dim):
        # weights are pre-transposed on the host: y = v @ W^T + b == v @ p[:k] + p[k]
        p = p_ref[...]
        return (jnp.dot(v, p[0:k_dim, :], preferred_element_type=jnp.float32)
                + p[k_dim:k_dim + 1, :])

    # ---------------- self-attention block (pre-LN + residual) ----------------
    h = layer_norm(x, ln[0:1, :], ln[1:2, :])
    qkv = linear(h, qkv_ref, D)                       # (BT, 3D): fused QKV, one MXU push
    q = qkv[:, 0:D]                                   # already scaled by 1/sqrt(HD)
    k = qkv[:, D:2 * D]
    v = qkv[:, 2 * D:3 * D]

    # Replicate K/V once per head block along sublanes and mask each block to its
    # own head's lanes -> attention over all batches & heads becomes 3 wide matmuls.
    hmask = hmask_ref[...]                            # (HBT, D)
    kx = jnp.concatenate([k] * H, axis=0) * hmask     # (HBT, D)
    vx = jnp.concatenate([v] * H, axis=0) * hmask     # (HBT, D)

    # s[t, h*BT + s'] = <q_t, k_s'> restricted to head h's lanes (contract last dims,
    # no physical transpose of K inside the kernel).  Scale already folded into q.
    s = jax.lax.dot_general(q, kx, (((1,), (1,)), ((), ())),
                            preferred_element_type=jnp.float32)       # (BT, HBT)
    s = s + bias_ref[...]                             # kill cross-batch pairs
    s = s - jnp.max(s, axis=-1, keepdims=True)        # safe: softmax is shift-invariant
    p = jnp.exp(s)
    # per-(row, head-block) denominators, broadcast back to (BT, HBT) in one matmul
    denom = jnp.dot(p, bsum_ref[...], preferred_element_type=jnp.float32)
    p = p * pl.reciprocal(denom, approx=True)         # EUP reciprocal, not VPU division
    attn = jnp.dot(p, vx, preferred_element_type=jnp.float32)         # (BT, D)
    attn = linear(attn, op_ref, D)                    # out_proj
    x1 = x + attn                                     # dropout p=0 -> identity

    # ---------------- FFN block (pre-LN + residual) ----------------
    h2 = layer_norm(x1, ln[2:3, :], ln[3:4, :])
    y = linear(h2, fc1_ref, D)                        # fc1
    y = jnp.maximum(y, 0.0)                           # relu
    y = linear(y, fc2_ref, FFN)                       # fc2
    # NOTE: output last dim is 32 (<128) -> masked stores; at this size that is only
    # ~2 vregs so an in-kernel relayout to a lane-dense slab would cost more than it saves.
    o_ref[...] = x1 + y


# ---------------- host-side packing (layout plumbing, done once) ----------------
def pack_params(params):
    (ln1_w, ln1_b, wq, bq, wk, bk, wv, bv, wo, bo,
     ln2_w, ln2_b, w1, b1, w2, b2) = params

    def stack_wb(w, b):                      # (out,in) PyTorch weight -> [(in,out); bias]
        return jnp.concatenate([w.T, b.reshape(1, -1)], axis=0)

    scale = 1.0 / math.sqrt(HD)              # fold attention scale into Q projection
    qkv_p = jnp.concatenate(
        [jnp.concatenate([wq * scale, wk, wv], axis=0).T,
         jnp.concatenate([bq * scale, bk, bv]).reshape(1, -1)], axis=0)  # (D+1, 3D)
    op_p = stack_wb(wo, bo)                                           # (D+1, D)
    fc1_p = stack_wb(w1, b1)                                          # (D+1, FFN)
    fc2_p = stack_wb(w2, b2)                                          # (FFN+1, D)
    ln_p = jnp.stack([ln1_w, ln1_b, ln2_w, ln2_b], axis=0)            # (4, D)

    # constant masks that fuse batch + heads into single wide matmuls
    j = jnp.arange(HBT)
    e = jnp.arange(D)
    t = jnp.arange(BT)
    hmask = (j[:, None] // BT == e[None, :] // HD).astype(jnp.float32)        # (HBT, D)
    same_batch = (j[None, :] % BT) // T == t[:, None] // T
    attn_bias = jnp.where(same_batch, 0.0, NEG_INF).astype(jnp.float32)       # (BT, HBT)
    bsum = (j[:, None] // BT == j[None, :] // BT).astype(jnp.float32)         # (HBT, HBT)
    return (ln_p, qkv_p, op_p, fc1_p, fc2_p, hmask, attn_bias, bsum)


@functools.partial(jax.jit, static_argnames=())
def transformer_encoder_layer(x, params):
    packed = pack_params(params)
    x2 = x.reshape(BT, D)                             # fold batch into matmul rows
    args = (x2,) + packed
    in_specs = [pl.BlockSpec(a.shape, lambda i: (0, 0)) for a in args]
    out = pl.pallas_call(
        encoder_layer_kernel,
        out_shape=jax.ShapeDtypeStruct((BT, D), jnp.float32),
        grid_spec=pltpu.PrefetchScalarGridSpec(
            num_scalar_prefetch=0,
            grid=(1,),                                # single step: no per-batch grid overhead
            in_specs=in_specs,
            out_specs=pl.BlockSpec((BT, D), lambda i: (0, 0)),
        ),
        compiler_params=pltpu.CompilerParams(dimension_semantics=("arbitrary",)),
    )(*args)
    return out.reshape(B, T, D)


# ---------------- deterministic parameter init (synthetic, PyTorch layout) ----------------
def xavier_uniform(key, shape, gain=1.0):
    fan_out, fan_in = shape
    a = gain * math.sqrt(6.0 / (fan_in + fan_out))
    return jax.random.uniform(key, shape, jnp.float32, -a, a)


def init_params(key):
    ks = jax.random.split(key, 12)
    g = 1.0 / math.sqrt(2.0)
    wq = xavier_uniform(ks[0], (D, D), g)
    wk = xavier_uniform(ks[1], (D, D), g)
    wv = xavier_uniform(ks[2], (D, D), g)
    wo = xavier_uniform(ks[3], (D, D), 1.0)
    bq = 0.02 * jax.random.normal(ks[4], (D,), jnp.float32)
    bk = 0.02 * jax.random.normal(ks[5], (D,), jnp.float32)
    bv = 0.02 * jax.random.normal(ks[6], (D,), jnp.float32)
    bo = jnp.zeros((D,), jnp.float32)                 # out_proj bias init to 0
    w1 = xavier_uniform(ks[7], (FFN, D), 1.0)
    b1 = 0.02 * jax.random.normal(ks[8], (FFN,), jnp.float32)
    w2 = xavier_uniform(ks[9], (D, FFN), 1.0)
    b2 = 0.02 * jax.random.normal(ks[10], (D,), jnp.float32)
    ln1_w = jnp.ones((D,), jnp.float32)
    ln1_b = jnp.zeros((D,), jnp.float32)
    ln2_w = jnp.ones((D,), jnp.float32)
    ln2_b = jnp.zeros((D,), jnp.float32)
    return (ln1_w, ln1_b, wq, bq, wk, bk, wv, bv, wo, bo,
            ln2_w, ln2_b, w1, b1, w2, b2)


# ---------------- pure-JAX reference (independent formulation) ----------------
def reference(x, params):
    (ln1_w, ln1_b, wq, bq, wk, bk, wv, bv, wo, bo,
     ln2_w, ln2_b, w1, b1, w2, b2) = params

    def ln(v, w, b):
        mu = v.mean(-1, keepdims=True)
        var = ((v - mu) ** 2).mean(-1, keepdims=True)
        return (v - mu) / jnp.sqrt(var + EPS) * w + b

    res = x
    h = ln(x, ln1_w, ln1_b)
    q = (h @ wq.T + bq).reshape(B, T, H, HD).transpose(0, 2, 1, 3)
    k = (h @ wk.T + bk).reshape(B, T, H, HD).transpose(0, 2, 1, 3)
    v = (h @ wv.T + bv).reshape(B, T, H, HD).transpose(0, 2, 1, 3)
    s = jnp.einsum("bhtd,bhsd->bhts", q, k) / math.sqrt(HD)
    p = jax.nn.softmax(s, axis=-1)
    a = jnp.einsum("bhts,bhsd->bhtd", p, v).transpose(0, 2, 1, 3).reshape(B, T, D)
    a = a @ wo.T + bo
    x1 = res + a
    h2 = ln(x1, ln2_w, ln2_b)
    y = jnp.maximum(h2 @ w1.T + b1, 0.0)
    y = y @ w2.T + b2
    return x1 + y


if __name__ == "__main__":
    key = jax.random.PRNGKey(0)
    k_x, k_p = jax.random.split(key)
    x = jax.random.normal(k_x, (B, T, D), jnp.float32)
    params = init_params(k_p)

    out = transformer_encoder_layer(x, params)
    out = jax.block_until_ready(out)

    ref = reference(x, params)
    assert out.shape == (B, T, D)
    assert jnp.allclose(out, ref, atol=1e-2, rtol=1e-2), "mismatch vs reference"
    print("KERNEL_OK")
</pallas_src>

<mosaic_0001>
module attributes {stable_mosaic.version = 11 : i64} {
  func.func @encoder_layer_kernel(%arg0: i32, %arg1: memref<16x32xf32, #tpu.memory_space<vmem>>, %arg2: memref<4x32xf32, #tpu.memory_space<vmem>>, %arg3: memref<33x96xf32, #tpu.memory_space<vmem>>, %arg4: memref<33x32xf32, #tpu.memory_space<vmem>>, %arg5: memref<33x32xf32, #tpu.memory_space<vmem>>, %arg6: memref<33x32xf32, #tpu.memory_space<vmem>>, %arg7: memref<64x32xf32, #tpu.memory_space<vmem>>, %arg8: memref<16x64xf32, #tpu.memory_space<vmem>>, %arg9: memref<64x64xf32, #tpu.memory_space<vmem>>, %arg10: memref<16x32xf32, #tpu.memory_space<vmem>>) attributes {dimension_semantics = [#tpu.dimension_semantics<arbitrary>], iteration_bounds = array<i64: 1>, scalar_prefetch = 0 : i64, scratch_operands = 0 : i64, tpu.core_type = #tpu.core_type<tc>, window_params = [{pipeline_mode = #tpu.pipeline_mode<synchronous>, transform_indices = @transform_0, window_bounds = array<i64: 16, 32>}, {pipeline_mode = #tpu.pipeline_mode<synchronous>, transform_indices = @transform_1, window_bounds = array<i64: 4, 32>}, {pipeline_mode = #tpu.pipeline_mode<synchronous>, transform_indices = @transform_2, window_bounds = array<i64: 33, 96>}, {pipeline_mode = #tpu.pipeline_mode<synchronous>, transform_indices = @transform_3, window_bounds = array<i64: 33, 32>}, {pipeline_mode = #tpu.pipeline_mode<synchronous>, transform_indices = @transform_4, window_bounds = array<i64: 33, 32>}, {pipeline_mode = #tpu.pipeline_mode<synchronous>, transform_indices = @transform_5, window_bounds = array<i64: 33, 32>}, {pipeline_mode = #tpu.pipeline_mode<synchronous>, transform_indices = @transform_6, window_bounds = array<i64: 64, 32>}, {pipeline_mode = #tpu.pipeline_mode<synchronous>, transform_indices = @transform_7, window_bounds = array<i64: 16, 64>}, {pipeline_mode = #tpu.pipeline_mode<synchronous>, transform_indices = @transform_8, window_bounds = array<i64: 64, 64>}, {pipeline_mode = #tpu.pipeline_mode<synchronous>, transform_indices = @transform_9, window_bounds = array<i64: 16, 32>}]} {
    %c0 = arith.constant 0 : index
    %c0_0 = arith.constant 0 : index
    %0 = vector.load %arg1[%c0, %c0_0] : memref<16x32xf32, #tpu.memory_space<vmem>>, vector<16x32xf32>
    %c0_1 = arith.constant 0 : index
    %c0_2 = arith.constant 0 : index
    %1 = vector.load %arg2[%c0_1, %c0_2] : memref<4x32xf32, #tpu.memory_space<vmem>>, vector<4x32xf32>
    %2 = vector.extract_strided_slice %1 {offsets = [0, 0], sizes = [1, 32], strides = [1, 1]} : vector<4x32xf32> to vector<1x32xf32>
    %3 = vector.extract_strided_slice %1 {offsets = [1, 0], sizes = [1, 32], strides = [1, 1]} : vector<4x32xf32> to vector<1x32xf32>
    %cst = arith.constant dense<0.000000e+00> : vector<16xf32>
    %4 = vector.multi_reduction <add>, %0, %cst [1] : vector<16x32xf32> to vector<16xf32>
    %5 = vector.shape_cast %4 : vector<16xf32> to vector<16x1xf32>
    %cst_3 = arith.constant 3.200000e+01 : f32
    %6 = vector.broadcast %cst_3 : f32 to vector<16x1xf32>
    %7 = arith.divf %5, %6 : vector<16x1xf32>
    %8 = vector.broadcast %7 : vector<16x1xf32> to vector<16x32xf32>
    %9 = arith.subf %0, %8 : vector<16x32xf32>
    %10 = arith.mulf %9, %9 : vector<16x32xf32>
    %cst_4 = arith.constant dense<0.000000e+00> : vector<16xf32>
    %11 = vector.multi_reduction <add>, %10, %cst_4 [1] : vector<16x32xf32> to vector<16xf32>
    %12 = vector.shape_cast %11 : vector<16xf32> to vector<16x1xf32>
    %cst_5 = arith.constant 3.200000e+01 : f32
    %13 = vector.broadcast %cst_5 : f32 to vector<16x1xf32>
    %14 = arith.divf %12, %13 : vector<16x1xf32>
    %15 = vector.broadcast %7 : vector<16x1xf32> to vector<16x32xf32>
    %16 = arith.subf %0, %15 : vector<16x32xf32>
    %cst_6 = arith.constant 9.99999974E-6 : f32
    %17 = vector.broadcast %cst_6 : f32 to vector<16x1xf32>
    %18 = arith.addf %14, %17 : vector<16x1xf32>
    %19 = math.rsqrt %18 : vector<16x1xf32>
    %20 = vector.broadcast %19 : vector<16x1xf32> to vector<16x32xf32>
    %21 = arith.mulf %16, %20 : vector<16x32xf32>
    %22 = vector.broadcast %2 : vector<1x32xf32> to vector<16x32xf32>
    %23 = arith.mulf %21, %22 : vector<16x32xf32>
    %24 = vector.broadcast %3 : vector<1x32xf32> to vector<16x32xf32>
    %25 = arith.addf %23, %24 : vector<16x32xf32>
    %c0_7 = arith.constant 0 : index
    %c0_8 = arith.constant 0 : index
    %26 = vector.load %arg3[%c0_7, %c0_8] : memref<33x96xf32, #tpu.memory_space<vmem>>, vector<33x96xf32>
    %27 = vector.extract_strided_slice %26 {offsets = [0, 0], sizes = [32, 96], strides = [1, 1]} : vector<33x96xf32> to vector<32x96xf32>
    %cst_9 = arith.constant dense<0.000000e+00> : vector<16x96xf32>
    %28 = tpu.matmul %25, %27, %cst_9 {dimension_numbers = #tpu.dot_dimension_numbers<[1], [0], [0], [1], [0, 0, 1, 1], [], []>, precision = #tpu.contract_precision<fp32>} : vector<16x32xf32>, vector<32x96xf32>, vector<16x96xf32> -> vector<16x96xf32>
    %29 = vector.extract_strided_slice %26 {offsets = [32, 0], sizes = [1, 96], strides = [1, 1]} : vector<33x96xf32> to vector<1x96xf32>
    %30 = vector.broadcast %29 : vector<1x96xf32> to vector<16x96xf32>
    %31 = arith.addf %28, %30 : vector<16x96xf32>
    %32 = vector.extract_strided_slice %31 {offsets = [0, 0], sizes = [16, 32], strides = [1, 1]} : vector<16x96xf32> to vector<16x32xf32>
    %33 = vector.extract_strided_slice %31 {offsets = [0, 32], sizes = [16, 32], strides = [1, 1]} : vector<16x96xf32> to vector<16x32xf32>
    %34 = vector.extract_strided_slice %31 {offsets = [0, 64], sizes = [16, 32], strides = [1, 1]} : vector<16x96xf32> to vector<16x32xf32>
    %c0_10 = arith.constant 0 : index
    %c0_11 = arith.constant 0 : index
    %35 = vector.load %arg7[%c0_10, %c0_11] : memref<64x32xf32, #tpu.memory_space<vmem>>, vector<64x32xf32>
    %36 = tpu.concatenate %33, %33, %33, %33 in 0 : vector<16x32xf32>, vector<16x32xf32>, vector<16x32xf32>, vector<16x32xf32> -> vector<64x32xf32>
    %37 = arith.mulf %36, %35 : vector<64x32xf32>
    %38 = tpu.concatenate %34, %34, %34, %34 in 0 : vector<16x32xf32>, vector<16x32xf32>, vector<16x32xf32>, vector<16x32xf32> -> vector<64x32xf32>
    %39 = arith.mulf %38, %35 : vector<64x32xf32>
    %cst_12 = arith.constant dense<0.000000e+00> : vector<16x64xf32>
    %40 = tpu.matmul %32, %37, %cst_12 {dimension_numbers = #tpu.dot_dimension_numbers<[1], [1], [0], [0], [0, 0, 1, 0], [], []>, precision = #tpu.contract_precision<fp32>} : vector<16x32xf32>, vector<64x32xf32>, vector<16x64xf32> -> vector<16x64xf32>
    %c0_13 = arith.constant 0 : index
    %c0_14 = arith.constant 0 : index
    %41 = vector.load %arg8[%c0_13, %c0_14] : memref<16x64xf32, #tpu.memory_space<vmem>>, vector<16x64xf32>
    %42 = arith.addf %40, %41 : vector<16x64xf32>
    %cst_15 = arith.constant dense<0xFF800000> : vector<16xf32>
    %43 = vector.multi_reduction <maximumf>, %42, %cst_15 [1] : vector<16x64xf32> to vector<16xf32>
    %44 = vector.shape_cast %43 : vector<16xf32> to vector<16x1xf32>
    %45 = vector.broadcast %44 : vector<16x1xf32> to vector<16x64xf32>
    %46 = arith.subf %42, %45 : vector<16x64xf32>
    %47 = math.exp %46 : vector<16x64xf32>
    %c0_16 = arith.constant 0 : index
    %c0_17 = arith.constant 0 : index
    %48 = vector.load %arg9[%c0_16, %c0_17] : memref<64x64xf32, #tpu.memory_space<vmem>>, vector<64x64xf32>
    %cst_18 = arith.constant dense<0.000000e+00> : vector<16x64xf32>
    %49 = tpu.matmul %47, %48, %cst_18 {dimension_numbers = #tpu.dot_dimension_numbers<[1], [0], [0], [1], [0, 0, 1, 1], [], []>, precision = #tpu.contract_precision<fp32>} : vector<16x64xf32>, vector<64x64xf32>, vector<16x64xf32> -> vector<16x64xf32>
    %50 = tpu.reciprocal %49 {approx = true} : vector<16x64xf32> -> vector<16x64xf32>
    %51 = arith.mulf %47, %50 : vector<16x64xf32>
    %cst_19 = arith.constant dense<0.000000e+00> : vector<16x32xf32>
    %52 = tpu.matmul %51, %39, %cst_19 {dimension_numbers = #tpu.dot_dimension_numbers<[1], [0], [0], [1], [0, 0, 1, 1], [], []>, precision = #tpu.contract_precision<fp32>} : vector<16x64xf32>, vector<64x32xf32>, vector<16x32xf32> -> vector<16x32xf32>
    %c0_20 = arith.constant 0 : index
    %c0_21 = arith.constant 0 : index
    %53 = vector.load %arg4[%c0_20, %c0_21] : memref<33x32xf32, #tpu.memory_space<vmem>>, vector<33x32xf32>
    %54 = vector.extract_strided_slice %53 {offsets = [0, 0], sizes = [32, 32], strides = [1, 1]} : vector<33x32xf32> to vector<32x32xf32>
    %cst_22 = arith.constant dense<0.000000e+00> : vector<16x32xf32>
    %55 = tpu.matmul %52, %54, %cst_22 {dimension_numbers = #tpu.dot_dimension_numbers<[1], [0], [0], [1], [0, 0, 1, 1], [], []>, precision = #tpu.contract_precision<fp32>} : vector<16x32xf32>, vector<32x32xf32>, vector<16x32xf32> -> vector<16x32xf32>
    %56 = vector.extract_strided_slice %53 {offsets = [32, 0], sizes = [1, 32], strides = [1, 1]} : vector<33x32xf32> to vector<1x32xf32>
    %57 = vector.broadcast %56 : vector<1x32xf32> to vector<16x32xf32>
    %58 = arith.addf %55, %57 : vector<16x32xf32>
    %59 = arith.addf %0, %58 : vector<16x32xf32>
    %60 = vector.extract_strided_slice %1 {offsets = [2, 0], sizes = [1, 32], strides = [1, 1]} : vector<4x32xf32> to vector<1x32xf32>
    %61 = vector.extract_strided_slice %1 {offsets = [3, 0], sizes = [1, 32], strides = [1, 1]} : vector<4x32xf32> to vector<1x32xf32>
    %cst_23 = arith.constant dense<0.000000e+00> : vector<16xf32>
    %62 = vector.multi_reduction <add>, %59, %cst_23 [1] : vector<16x32xf32> to vector<16xf32>
    %63 = vector.shape_cast %62 : vector<16xf32> to vector<16x1xf32>
    %cst_24 = arith.constant 3.200000e+01 : f32
    %64 = vector.broadcast %cst_24 : f32 to vector<16x1xf32>
    %65 = arith.divf %63, %64 : vector<16x1xf32>
    %66 = vector.broadcast %65 : vector<16x1xf32> to vector<16x32xf32>
    %67 = arith.subf %59, %66 : vector<16x32xf32>
    %68 = arith.mulf %67, %67 : vector<16x32xf32>
    %cst_25 = arith.constant dense<0.000000e+00> : vector<16xf32>
    %69 = vector.multi_reduction <add>, %68, %cst_25 [1] : vector<16x32xf32> to vector<16xf32>
    %70 = vector.shape_cast %69 : vector<16xf32> to vector<16x1xf32>
    %cst_26 = arith.constant 3.200000e+01 : f32
    %71 = vector.broadcast %cst_26 : f32 to vector<16x1xf32>
    %72 = arith.divf %70, %71 : vector<16x1xf32>
    %73 = vector.broadcast %65 : vector<16x1xf32> to vector<16x32xf32>
    %74 = arith.subf %59, %73 : vector<16x32xf32>
    %cst_27 = arith.constant 9.99999974E-6 : f32
    %75 = vector.broadcast %cst_27 : f32 to vector<16x1xf32>
    %76 = arith.addf %72, %75 : vector<16x1xf32>
    %77 = math.rsqrt %76 : vector<16x1xf32>
    %78 = vector.broadcast %77 : vector<16x1xf32> to vector<16x32xf32>
    %79 = arith.mulf %74, %78 : vector<16x32xf32>
    %80 = vector.broadcast %60 : vector<1x32xf32> to vector<16x32xf32>
    %81 = arith.mulf %79, %80 : vector<16x32xf32>
    %82 = vector.broadcast %61 : vector<1x32xf32> to vector<16x32xf32>
    %83 = arith.addf %81, %82 : vector<16x32xf32>
    %c0_28 = arith.constant 0 : index
    %c0_29 = arith.constant 0 : index
    %84 = vector.load %arg5[%c0_28, %c0_29] : memref<33x32xf32, #tpu.memory_space<vmem>>, vector<33x32xf32>
    %85 = vector.extract_strided_slice %84 {offsets = [0, 0], sizes = [32, 32], strides = [1, 1]} : vector<33x32xf32> to vector<32x32xf32>
    %cst_30 = arith.constant dense<0.000000e+00> : vector<16x32xf32>
    %86 = tpu.matmul %83, %85, %cst_30 {dimension_numbers = #tpu.dot_dimension_numbers<[1], [0], [0], [1], [0, 0, 1, 1], [], []>, precision = #tpu.contract_precision<fp32>} : vector<16x32xf32>, vector<32x32xf32>, vector<16x32xf32> -> vector<16x32xf32>
    %87 = vector.extract_strided_slice %84 {offsets = [32, 0], sizes = [1, 32], strides = [1, 1]} : vector<33x32xf32> to vector<1x32xf32>
    %88 = vector.broadcast %87 : vector<1x32xf32> to vector<16x32xf32>
    %89 = arith.addf %86, %88 : vector<16x32xf32>
    %cst_31 = arith.constant 0.000000e+00 : f32
    %90 = vector.broadcast %cst_31 : f32 to vector<16x32xf32>
    %91 = arith.maximumf %89, %90 : vector<16x32xf32>
    %c0_32 = arith.constant 0 : index
    %c0_33 = arith.constant 0 : index
    %92 = vector.load %arg6[%c0_32, %c0_33] : memref<33x32xf32, #tpu.memory_space<vmem>>, vector<33x32xf32>
    %93 = vector.extract_strided_slice %92 {offsets = [0, 0], sizes = [32, 32], strides = [1, 1]} : vector<33x32xf32> to vector<32x32xf32>
    %cst_34 = arith.constant dense<0.000000e+00> : vector<16x32xf32>
    %94 = tpu.matmul %91, %93, %cst_34 {dimension_numbers = #tpu.dot_dimension_numbers<[1], [0], [0], [1], [0, 0, 1, 1], [], []>, precision = #tpu.contract_precision<fp32>} : vector<16x32xf32>, vector<32x32xf32>, vector<16x32xf32> -> vector<16x32xf32>
    %95 = vector.extract_strided_slice %92 {offsets = [32, 0], sizes = [1, 32], strides = [1, 1]} : vector<33x32xf32> to vector<1x32xf32>
    %96 = vector.broadcast %95 : vector<1x32xf32> to vector<16x32xf32>
    %97 = arith.addf %94, %96 : vector<16x32xf32>
    %98 = arith.addf %59, %97 : vector<16x32xf32>
    %c0_35 = arith.constant 0 : index
    %c0_36 = arith.constant 0 : index
    %99 = vector.load %arg10[%c0_35, %c0_36] : memref<16x32xf32, #tpu.memory_space<vmem>>, vector<16x32xf32>
    tpu.vector_store %arg10[%c0_35, %c0_36], %98 {strides = array<i32>} : memref<16x32xf32, #tpu.memory_space<vmem>>, vector<16x32xf32>,
    return
  }
  func.func @transform_0(%arg0: i32) -> (i32, i32) {
    %c0_i32 = arith.constant 0 : i32
    %c0_i32_0 = arith.constant 0 : i32
    %c0_i32_1 = arith.constant 0 : i32
    return %c0_i32, %c0_i32_0 : i32, i32
  }
  func.func @transform_1(%arg0: i32) -> (i32, i32) {
    %c0_i32 = arith.constant 0 : i32
    %c0_i32_0 = arith.constant 0 : i32
    %c0_i32_1 = arith.constant 0 : i32
    return %c0_i32, %c0_i32_0 : i32, i32
  }
  func.func @transform_2(%arg0: i32) -> (i32, i32) {
    %c0_i32 = arith.constant 0 : i32
    %c0_i32_0 = arith.constant 0 : i32
    %c0_i32_1 = arith.constant 0 : i32
    return %c0_i32, %c0_i32_0 : i32, i32
  }
  func.func @transform_3(%arg0: i32) -> (i32, i32) {
    %c0_i32 = arith.constant 0 : i32
    %c0_i32_0 = arith.constant 0 : i32
    %c0_i32_1 = arith.constant 0 : i32
    return %c0_i32, %c0_i32_0 : i32, i32
  }
  func.func @transform_4(%arg0: i32) -> (i32, i32) {
    %c0_i32 = arith.constant 0 : i32
    %c0_i32_0 = arith.constant 0 : i32
    %c0_i32_1 = arith.constant 0 : i32
    return %c0_i32, %c0_i32_0 : i32, i32
  }
  func.func @transform_5(%arg0: i32) -> (i32, i32) {
    %c0_i32 = arith.constant 0 : i32
    %c0_i32_0 = arith.constant 0 : i32
    %c0_i32_1 = arith.constant 0 : i32
    return %c0_i32, %c0_i32_0 : i32, i32
  }
  func.func @transform_6(%arg0: i32) -> (i32, i32) {
    %c0_i32 = arith.constant 0 : i32
    %c0_i32_0 = arith.constant 0 : i32
    %c0_i32_1 = arith.constant 0 : i32
    return %c0_i32, %c0_i32_0 : i32, i32
  }
  func.func @transform_7(%arg0: i32) -> (i32, i32) {
    %c0_i32 = arith.constant 0 : i32
    %c0_i32_0 = arith.constant 0 : i32
    %c0_i32_1 = arith.constant 0 : i32
    return %c0_i32, %c0_i32_0 : i32, i32
  }
  func.func @transform_8(%arg0: i32) -> (i32, i32) {
    %c0_i32 = arith.constant 0 : i32
    %c0_i32_0 = arith.constant 0 : i32
    %c0_i32_1 = arith.constant 0 : i32
    return %c0_i32, %c0_i32_0 : i32, i32
  }
  func.func @transform_9(%arg0: i32) -> (i32, i32) {
    %c0_i32 = arith.constant 0 : i32
    %c0_i32_0 = arith.constant 0 : i32
    %c0_i32_1 = arith.constant 0 : i32
    return %c0_i32, %c0_i32_0 : i32, i32
  }
}

</mosaic_0001>

<bundles_post_ra>
// kernel: transformer_encoder_layer.1
= control target key start
LH: loop header
LB: loop body
LE: loop exit
PB: predicated region body
PF: predicated region fallthrough
CT: control target
= control target key end

     0   :  { %vm36_vm0 = vcmask 261120   ;;  %s6396_s0 = inlined_call_operand.vmem [shape: f32[16,32], index: 0, kind: input, shape index: {}]   ;;  %s6397_s1 = inlined_call_operand.vmem [shape: f32[4,32], index: 1, kind: input, shape index: {}]   ;;  %s6398_s2 = inlined_call_operand.vmem [shape: f32[33,96], index: 2, kind: input, shape index: {}]   ;;  %s6399_s3 = inlined_call_operand.vmem [shape: f32[33,32], index: 3, kind: input, shape index: {}]   ;;  %s6400_s4 = inlined_call_operand.vmem [shape: f32[33,32], index: 4, kind: input, shape index: {}]   ;;  %s6401_s5 = inlined_call_operand.vmem [shape: f32[33,32], index: 5, kind: input, shape index: {}]   ;;  %s6402_s6 = inlined_call_operand.vmem [shape: f32[64,32], index: 6, kind: input, shape index: {}]   ;;  %s6403_s7 = inlined_call_operand.vmem [shape: f32[16,64], index: 7, kind: input, shape index: {}]   ;;  %s6404_s8 = inlined_call_operand.vmem [shape: f32[64,64], index: 8, kind: input, shape index: {}]   ;;  %s6405_s9 = inlined_call_operand.hbm [shape: f32[16,32], index: 9, kind: output, shape index: {}]  }
   0x1   :  { %v33_v0 = vld [vmem:[%s6396_s0] sm:$0xff]  ;;  %v34_v1 = vld [vmem:[%s6396_s0 + $0x8] sm:$0xff] }
   0x2   :  { %14 = vsyncpa [#allocation3], 0  ;;  %v37_v2 = vsel %vm36_vm0, %v33_v0, 0.0  ;;  %v40_v3 = vsel %vm36_vm0, %v34_v1, 0.0  ;;  %v79_v14 = vld [vmem:[%s6398_s2 + $0x18] sm:$0xff]  ;;  %v78_v15 = vld [vmem:[%s6398_s2 + $0x10] sm:$0xff]  ;;  %v64_v51 = vlaneseq }
   0x3   :  { %38 = vadd.xlane.f32.xlu0 %v37_v2  ;;  %v77_v16 = vld [vmem:[%s6398_s2 + $0x8] sm:$0xff]  ;;  %v5311_v17 = vand.u32 4294901760, %v79_v14  ;;  %v5313_v18 = vand.u32 4294901760, %v78_v15  ;;  %v76_v31 = vld [vmem:[%s6398_s2] sm:$0xff]  ;;  %v5367_v38 = vld [vmem:[%s6402_s6 + $0x30] sm:$0xff]  ;;  %s5228_s25 = smov 32  }
   0x4   :  { %v5315_v19 = vand.u32 4294901760, %v77_v16  ;;  %v5350_v32 = vand.u32 4294901760, %v76_v31  ;;  %v5372_v39 = vld [vmem:[%s6402_s6 + $0x38] sm:$0xff]  ;;  %v5379_v40 = vld [vmem:[%s6402_s6 + $0x28] sm:$0xff]  ;;  %v5391_v42 = vld [vmem:[%s6402_s6 + $0x20] sm:$0xff]  ;;  %v5412_v53 = vshrl.u32 %v64_v51, 7 }
   0x5   :  { %v5318_v20 = vsub.f32 %v79_v14, %v5311_v17  ;;  %v5321_v21 = vsub.f32 %v78_v15, %v5313_v18  ;;  %4575 = vmatprep.subr.mxu0 %v5311_v17  ;;  %v5384_v41 = vld [vmem:[%s6402_s6 + $0x18] sm:$0xff]  ;;  %v5396_v43 = vld [vmem:[%s6402_s6 + $0x8] sm:$0xff]  ;;  %v5403_v44 = vld [vmem:[%s6402_s6 + $0x10] sm:$0xff]  ;;  %vm1327_vm1 = vcmask 523264   ;;  %s5230_s12 = smov 64  }
   0x6   :  { %v5324_v22 = vsub.f32 %v77_v16, %v5315_v19  ;;  %4576 = vmatpush3.msra.mxu0 %v5311_v17  ;;  %v5353_v34 = vsub.f32 %v76_v31, %v5350_v32  ;;  %v5409_v45 = vld [vmem:[%s6402_s6] sm:$0xff]  ;;  %v66_v54 = vsub.s32 0, %v5412_v53  ;;  %v72_v56 = vsub.s32 1, %v5412_v53 }
   0x7   :  { %41 = vadd.xlane.f32.xlu0 %v40_v3  ;;  %v5329_v23 = vand.u32 4294901760, %v5318_v20  ;;  %v5332_v24 = vand.u32 4294901760, %v5321_v21  ;;  %4577 = vmatprep.subr.mxu0 %v5313_v18  ;;  %v35_v55 = vld [vmem:[%s6397_s1] sm:$0xf] }
   0x8   :  { %v5335_v25 = vand.u32 4294901760, %v5324_v22  ;;  %4578 = vmatpush3.msra.mxu0 %v5313_v18  ;;  %v5358_v35 = vand.u32 4294901760, %v5353_v34  ;;  %v67_v57 = vrot.slane %v35_v55, %v66_v54  ;;  %v73_v60 = vrot.slane %v35_v55, %v72_v56  ;;  %v4247_v16 = vld [vmem:[%s6398_s2 + $0x20] ss:$0 sm:$0xff]  ;;  %s5229_s2 = smov 96  }
   0x9   :  { %v208_v26 = vsub.f32 %v5318_v20, %v5329_v23  ;;  %v215_v27 = vsub.f32 %v5321_v21, %v5332_v24  ;;  %4579 = vmatprep.subr.mxu0 %v5315_v19 }
   0xa   :  { %v222_v28 = vsub.f32 %v5324_v22, %v5335_v25  ;;  %4580 = vmatpush3.msra.mxu0 %v5315_v19  ;;  %v229_v36 = vsub.f32 %v5353_v34, %v5358_v35 }
   0xb   :  { %v209_v29 = vand.u32 4294901760, %v208_v26  ;;  %v216_v30 = vand.u32 4294901760, %v215_v27  ;;  %4581 = vmatprep.subr.mxu0 %v5350_v32 }
   0xc   :  { %v223_v33 = vand.u32 4294901760, %v222_v28  ;;  %4582 = vmatpush3.msra.mxu0 %v5350_v32  ;;  %v230_v37 = vand.u32 4294901760, %v229_v36 }
   0xd   :  { %4586 = vmatprep.subr.mxu1 %v209_v29  ;;  %4597 = vmatprep.subr.mxu0 %v5318_v20 }
   0xe   :  { %4587 = vmatpush3.msra.mxu1 %v209_v29 }
   0xf   :  { %4588 = vmatprep.subr.mxu1 %v216_v30 }
  0x10   :  { %4589 = vmatpush3.msra.mxu1 %v216_v30 }
  0x11   :  { %4590 = vmatprep.subr.mxu1 %v223_v33 }
  0x12   :  { %4591 = vmatpush3.msra.mxu1 %v223_v33 }
  0x13   :  { %4592 = vmatprep.subr.mxu1 %v230_v37 }
  0x14   :  { %4593 = vmatpush3.msra.mxu1 %v230_v37 }
  0x15   :  { %4608 = vmatprep.subr.mxu1 %v5311_v17 }
  0x1d   :  { %649 = vrot.lane.b32.xlu0 %v5372_v39, %s5228_s25 }
  0x21   :  { %641 = vrot.lane.b32.xlu0 %v5384_v41, %s5228_s25 }
  0x25   :  { %637 = vrot.lane.b32.xlu0 %v5396_v43, %s5228_s25 }
  0x8c   :  { %v39_v4 = vpop.xlane.xlu0 %38 }
  0x8d   :  { %v44_v5 = vmul.f32 0.03125, %v39_v4 }
  0x8f   :  { %v5292_v6 = vsub.f32 %v33_v0, %v44_v5 }
  0x90   :  { %v42_v7 = vpop.xlane.xlu0 %41 }
  0x91   :  { %v45_v8 = vmul.f32 0.03125, %v42_v7  ;;  %v48_v9 = vmul.f32 %v5292_v6, %v5292_v6 }
  0x93   :  { %v5296_v10 = vsub.f32 %v34_v1, %v45_v8  ;;  %v50_v11 = vsel %vm36_vm0, %v48_v9, 0.0 }
  0x94   :  { %51 = vadd.xlane.f32.xlu1 %v50_v11  ;;  %v650_v37 = vpop.permute.xlu0 %649 }
  0x95   :  { %v49_v12 = vmul.f32 %v5296_v10, %v5296_v10 }
  0x97   :  { %v53_v13 = vsel %vm36_vm0, %v49_v12, 0.0 }
  0x98   :  { %54 = vadd.xlane.f32.xlu1 %v53_v13  ;;  %v642_v56 = vpop.permute.xlu0 %641 }
  0xa9   :  { %647 = vrot.lane.b32.xlu1 %v5367_v38, %s5228_s25 }
  0xad   :  { %645 = vrot.lane.b32.xlu1 %v5379_v40, %s5228_s25 }
  0xb1   :  { %643 = vrot.lane.b32.xlu1 %v5391_v42, %s5228_s25 }
  0xb5   :  { %639 = vrot.lane.b32.xlu1 %v5403_v44, %s5228_s25 }
  0xb9   :  { %635 = vrot.lane.b32.xlu1 %v5409_v45, %s5228_s25 }
 0x11d   :  { %v52_v46 = vpop.xlane.xlu1 %51 }
 0x11e   :  { %v56_v47 = vmul.f32 0.03125, %v52_v46 }
 0x120   :  { %v58_v48 = vadd.f32 1e-05, %v56_v47 }
 0x121   :  { %v55_v49 = vpop.xlane.xlu1 %54 }
 0x122   :  { %5187 = vrsqrt.f32 %v58_v48  ;;  %v57_v50 = vmul.f32 0.03125, %v55_v49 }
 0x124   :  { %v59_v52 = vadd.f32 1e-05, %v57_v50 }
 0x126   :  { %5189 = vrsqrt.f32 %v59_v52 }
 0x12f   :  { %v5188_v58 = vpop.eup %5187 }
 0x130   :  { %v62_v59 = vmul.f32 %v5188_v58, %v5292_v6 }
 0x132   :  { %v68_v61 = vmul.f32 %v67_v57, %v62_v59 }
 0x133   :  { %v5190_v62 = vpop.eup %5189 }
 0x134   :  { %v74_v63 = vadd.f32 %v73_v60, %v68_v61  ;;  %v63_v0 = vmul.f32 %v5190_v62, %v5296_v10 }
 0x136   :  { %v86_v1 = vsel %vm36_vm0, %v74_v63, 0  ;;  %v69_v2 = vmul.f32 %v67_v57, %v63_v0  ;;  %v638_v0 = vpop.permute.xlu0 %637 }
 0x137   :  { %v160_v3 = vand.u32 4294901760, %v86_v1 }
 0x138   :  { %v75_v4 = vadd.f32 %v73_v60, %v69_v2 }
 0x139   :  { %4594 = vmatprep.mubr.f32.mxu1 %v160_v3  ;;  %v161_v5 = vsub.f32 %v86_v1, %v160_v3 }
 0x13a   :  { %v89_v7 = vsel %vm36_vm0, %v75_v4, 0 }
 0x13b   :  { %v170_v8 = vand.u32 4294901760, %v89_v7  ;;  %v162_v9 = vand.u32 4294901760, %v161_v5 }
 0x13d   :  { %v171_v11 = vsub.f32 %v89_v7, %v170_v8  ;;  %4595 = vmatmul.mubr.f32.vlgmr.msra.gmra.mxu1 %v170_v8  ;;  %v163_v6 = vsub.f32 %v161_v5, %v162_v9 }
 0x13e   :  { %4609 = vmatpush3.msra.mxu1 %v5311_v17  ;;  %4616 = vmatprep.mubr.f32.mxu1 %v162_v9 }
 0x13f   :  { %4610 = vmatprep.subr.mxu1 %v5313_v18  ;;  %v164_v10 = vand.u32 4294901760, %v163_v6  ;;  %v172_v12 = vand.u32 4294901760, %v171_v11 }
 0x140   :  { %4611 = vmatpush3.msra.mxu1 %v5313_v18 }
 0x141   :  { %4612 = vmatprep.subr.mxu1 %v5315_v19  ;;  %4583 = vmatprep.mubr.f32.mxu0 %v164_v10  ;;  %v173_v13 = vsub.f32 %v171_v11, %v172_v12 }
 0x142   :  { %4613 = vmatpush3.msra.mxu1 %v5315_v19 }
 0x143   :  { %4614 = vmatprep.subr.mxu1 %v5350_v32  ;;  %v174_v14 = vand.u32 4294901760, %v173_v13 }
 0x144   :  { %4615 = vmatpush3.msra.mxu1 %v5350_v32 }
 0x145   :  { %4617 = vmatmul.mubr.f32.vlgmr.msra.gmra.mxu1 %v172_v12  ;;  %4630 = vmatprep.subr.mxu1 %v5311_v17 }
 0x146   :  { %4584 = vmatmul.mubr.f32.vlgmr.msra.gmra.mxu0 %v174_v14  ;;  %4631 = vmatpush3.msra.mxu1 %v5311_v17 }
 0x147   :  { %4598 = vmatpush3.msra.mxu0 %v5318_v20  ;;  %4638 = vmatprep.mubr.f32.mxu1 %v160_v3 }
 0x148   :  { %4599 = vmatprep.subr.mxu0 %v5321_v21  ;;  %4605 = vmatprep.mubr.f32.mxu0 %v161_v5 }
 0x149   :  { %4632 = vmatprep.subr.mxu1 %v5313_v18  ;;  %4600 = vmatpush3.msra.mxu0 %v5321_v21 }
 0x14a   :  { %4633 = vmatpush3.msra.mxu1 %v5313_v18  ;;  %4601 = vmatprep.subr.mxu0 %v5324_v22 }
 0x14b   :  { %4634 = vmatprep.subr.mxu1 %v5315_v19  ;;  %4602 = vmatpush3.msra.mxu0 %v5324_v22 }
 0x14c   :  { %4635 = vmatpush3.msra.mxu1 %v5315_v19  ;;  %4603 = vmatprep.subr.mxu0 %v5353_v34 }
 0x14d   :  { %4636 = vmatprep.subr.mxu1 %v5350_v32  ;;  %4604 = vmatpush3.msra.mxu0 %v5353_v34 }
 0x14e   :  { %4637 = vmatpush3.msra.mxu1 %v5350_v32  ;;  %4606 = vmatmul.mubr.f32.vlgmr.msra.gmra.mxu0 %v171_v11 }
 0x14f   :  { %4619 = vmatprep.subr.mxu0 %v5329_v23  ;;  %4639 = vmatmul.mubr.f32.vlgmr.msra.gmra.mxu1 %v170_v8 }
 0x150   :  { %4620 = vmatpush3.msra.mxu0 %v5329_v23  ;;  %4627 = vmatprep.mubr.f32.mxu0 %v160_v3  ;;  %v648_v23 = vpop.permute.xlu1 %647 }
 0x151   :  { %4621 = vmatprep.subr.mxu0 %v5332_v24 }
 0x152   :  { %4622 = vmatpush3.msra.mxu0 %v5332_v24 }
 0x153   :  { %4623 = vmatprep.subr.mxu0 %v5335_v25 }
 0x154   :  { %4624 = vmatpush3.msra.mxu0 %v5335_v25  ;;  %v646_v31 = vpop.permute.xlu1 %645 }
 0x155   :  { %4625 = vmatprep.subr.mxu0 %v5358_v35 }
 0x156   :  { %4626 = vmatpush3.msra.mxu0 %v5358_v35 }
 0x157   :  { %4628 = vmatmul.mubr.f32.vlgmr.msra.gmra.mxu0 %v170_v8 }
 0x158   :  { %v644_v50 = vpop.permute.xlu1 %643 }
 0x15c   :  { %v640_v59 = vpop.permute.xlu1 %639 }
 0x160   :  { %v636_v3 = vpop.permute.xlu1 %635 }
 0x1fd   :  { %v4596_v17 = vpop.f32.mrf.mxu1 }
 0x1ff   :  { %v267_v22 = vpop.f32.mrf.mxu1 }
 0x205   :  { %v4618_v26 = vpop.f32.mrf.mxu1 }
 0x206   :  { %v4585_v15 = vpop.f32.mrf.mxu0 }
 0x207   :  { %v177_v19 = vadd.f32 %v4585_v15, %v4247_v16  ;;  %v437_v30 = vpop.f32.mrf.mxu1 }
 0x208   :  { %v166_v18 = vpop.f32.mrf.mxu0 }
 0x209   :  { %v167_v20 = vadd.f32 %v4247_v16, %v166_v18  ;;  %v274_v24 = vadd.f32 %v4596_v17, %v177_v19 }
 0x20b   :  { %v268_v28 = vadd.f32 %v267_v22, %v167_v20 }
 0x20e   :  { %v4607_v21 = vpop.f32.mrf.mxu0 }
 0x20f   :  { %v361_v27 = vadd.f32 %v4607_v21, %v274_v24  ;;  %v4640_v33 = vpop.f32.mrf.mxu1 }
 0x210   :  { %v353_v25 = vpop.f32.mrf.mxu0 }
 0x211   :  { %v354_v29 = vadd.f32 %v353_v25, %v268_v28  ;;  %v446_v32 = vadd.f32 %v4618_v26, %v361_v27  ;;  %v609_v49 = vpop.f32.mrf.mxu1 }
 0x213   :  { %v438_v36 = vadd.f32 %v437_v30, %v354_v29 }
 0x217   :  { %v4629_v34 = vpop.f32.mrf.mxu0 }
 0x218   :  { %v535_v35 = vadd.f32 %v4629_v34, %v446_v32 }
 0x219   :  { %v528_v46 = vpop.f32.mrf.mxu0 }
 0x21a   :  { %v5456_v47 = vadd.f32 %v4640_v33, %v535_v35  ;;  %v529_v48 = vadd.f32 %v528_v46, %v438_v36 }
 0x21c   :  { %v5458_v51 = vadd.f32 %v609_v49, %v529_v48  ;;  %v666_v52 = vmul.f32 %v650_v37, %v5456_v47  ;;  %v664_v58 = vmul.f32 %v646_v31, %v5456_v47  ;;  %v662_v63 = vmul.f32 %v642_v56, %v5456_v47 }
 0x21d   :  { %v660_v5 = vmul.f32 %v638_v0, %v5456_v47 }
 0x21e   :  { %723 = vrot.lane.b32.xlu0 %v666_v52, %s5229_s2  ;;  %v665_v54 = vmul.f32 %v648_v23, %v5458_v51  ;;  %v726_v55 = vsel %vm36_vm0, %v5458_v51, 0  ;;  %v663_v61 = vmul.f32 %v644_v50, %v5458_v51  ;;  %v661_v2 = vmul.f32 %v640_v59, %v5458_v51 }
 0x21f   :  { %v5464_v57 = vand.u32 4294901760, %v726_v55  ;;  %v659_v7 = vmul.f32 %v636_v3, %v5458_v51 }
 0x220   :  { %721 = vrot.lane.b32.xlu1 %v665_v54, %s5229_s2  ;;  %v729_v54 = vsel %vm36_vm0, %v5456_v47, 0 }
 0x221   :  { %4676 = vmatprep.mubr.f32.mxu1 %v5464_v57  ;;  %v5469_v60 = vsub.f32 %v726_v55, %v5464_v57 }
 0x222   :  { %719 = vrot.lane.b32.xlu0 %v664_v58, %s5229_s2 }
 0x223   :  { %v822_v62 = vand.u32 4294901760, %v5469_v60 }
 0x224   :  { %717 = vrot.lane.b32.xlu1 %v663_v61, %s5229_s2 }
 0x225   :  { %v823_v1 = vsub.f32 %v5469_v60, %v822_v62 }
 0x226   :  { %715 = vrot.lane.b32.xlu0 %v662_v63, %s5229_s2  ;;  %v5554_v63 = vand.u32 4294901760, %v729_v54 }
 0x227   :  { %v824_v4 = vand.u32 4294901760, %v823_v1 }
 0x228   :  { %713 = vrot.lane.b32.xlu1 %v661_v2, %s5229_s2 }
 0x229   :  { %4657 = vmatprep.mubr.f32.mxu0 %v824_v4 }
 0x22a   :  { %711 = vrot.lane.b32.xlu0 %v660_v5, %s5229_s2  ;;  %v5567_v5 = vsub.f32 %v729_v54, %v5554_v63 }
 0x22c   :  { %709 = vrot.lane.b32.xlu1 %v659_v7, %s5229_s2 }
 0x290   :  { %v724_v8 = vpop.permute.xlu0 %723 }
 0x291   :  { %v745_v9 = vsel %vm36_vm0, %v724_v8, 0 }
 0x292   :  { %v5481_v11 = vand.u32 4294901760, %v745_v9  ;;  %v722_v6 = vpop.permute.xlu1 %721 }
 0x293   :  { %v743_v10 = vsel %vm36_vm0, %v722_v6, 0 }
 0x294   :  { %v5485_v12 = vsub.f32 %v745_v9, %v5481_v11  ;;  %v5487_v13 = vand.u32 4294901760, %v743_v10  ;;  %4641 = vmatprep.subr.mxu0 %v5481_v11  ;;  %v720_v14 = vpop.permute.xlu0 %719 }
 0x295   :  { %v741_v15 = vsel %vm36_vm0, %v720_v14, 0  ;;  %4642 = vmatpush3.xpose.msra.mxu0 %v5481_v11 }
 0x296   :  { %v5493_v16 = vsub.f32 %v743_v10, %v5487_v13  ;;  %v5495_v17 = vand.u32 4294901760, %v741_v15  ;;  %v718_v18 = vpop.permute.xlu1 %717  ;;  %4643 = vmatprep.subr.mxu0 %v5487_v13  ;;  %v5499_v19 = vand.u32 4294901760, %v5485_v12  ;;  %v832_v10 = vand.u32 4294901760, %v5567_v5 }
 0x297   :  { %v739_v20 = vsel %vm36_vm0, %v718_v18, 0 }
 0x298   :  { %v5503_v21 = vsub.f32 %v741_v15, %v5495_v17  ;;  %v5505_v22 = vand.u32 4294901760, %v739_v20  ;;  %v716_v23 = vpop.permute.xlu0 %715  ;;  %v860_v24 = vsub.f32 %v5485_v12, %v5499_v19  ;;  %v5510_v26 = vand.u32 4294901760, %v5493_v16 }
 0x299   :  { %v737_v25 = vsel %vm36_vm0, %v716_v23, 0  ;;  %4644 = vmatpush3.xpose.msra.mxu0 %v5487_v13 }
 0x29a   :  { %v5515_v27 = vsub.f32 %v739_v20, %v5505_v22  ;;  %v5517_v28 = vand.u32 4294901760, %v737_v25  ;;  %v714_v29 = vpop.permute.xlu1 %713  ;;  %4645 = vmatprep.subr.mxu0 %v5495_v17  ;;  %v861_v30 = vand.u32 4294901760, %v860_v24  ;;  %v867_v31 = vsub.f32 %v5493_v16, %v5510_v26 }
 0x29b   :  { %v735_v32 = vsel %vm36_vm0, %v714_v29, 0  ;;  %v5524_v33 = vand.u32 4294901760, %v5503_v21  ;;  %v833_v20 = vsub.f32 %v5567_v5, %v832_v10 }
 0x29c   :  { %v5527_v34 = vsub.f32 %v737_v25, %v5517_v28  ;;  %v5529_v35 = vand.u32 4294901760, %v735_v32  ;;  %4660 = vmatprep.subr.mxu1 %v861_v30  ;;  %v712_v36 = vpop.permute.xlu0 %711  ;;  %v868_v37 = vand.u32 4294901760, %v867_v31  ;;  %v5532_v46 = vand.u32 4294901760, %v5515_v27 }
 0x29d   :  { %v733_v48 = vsel %vm36_vm0, %v712_v36, 0  ;;  %4646 = vmatpush3.xpose.msra.mxu0 %v5495_v17  ;;  %4661 = vmatpush3.xpose.msra.mxu1 %v861_v30  ;;  %v874_v49 = vsub.f32 %v5503_v21, %v5524_v33  ;;  %v834_v25 = vand.u32 4294901760, %v833_v20  ;;  %v1342_v20 = vld [vmem:[%s6404_s8 + $0x10] sm:$0xff] }
 0x29e   :  { %v710_v50 = vpop.permute.xlu1 %709  ;;  %4647 = vmatprep.subr.mxu0 %v5505_v22  ;;  %4662 = vmatprep.subr.mxu1 %v868_v37  ;;  %v5539_v52 = vand.u32 4294901760, %v733_v48  ;;  %v5544_v55 = vsub.f32 %v735_v32, %v5529_v35  ;;  %v881_v58 = vsub.f32 %v5515_v27, %v5532_v46  ;;  %v5549_v59 = vand.u32 4294901760, %v5527_v34 }
 0x29f   :  { %v875_v56 = vand.u32 4294901760, %v874_v49  ;;  %v731_v61 = vsel %vm36_vm0, %v710_v50, 0 }
 0x2a0   :  { %v900_v0 = vsub.f32 %v733_v48, %v5539_v52  ;;  %v5557_v1 = vand.u32 4294901760, %v731_v61  ;;  %v882_v2 = vand.u32 4294901760, %v881_v58  ;;  %v888_v3 = vsub.f32 %v5527_v34, %v5549_v59  ;;  %v1346_v58 = vld [vmem:[%s6404_s8 + $0x30] sm:$0xff] }
 0x2a1   :  { %4648 = vmatpush3.xpose.msra.mxu0 %v5505_v22  ;;  %4663 = vmatpush3.xpose.msra.mxu1 %v868_v37  ;;  %v5562_v4 = vand.u32 4294901760, %v5544_v55 }
 0x2a2   :  { %4649 = vmatprep.subr.mxu0 %v5517_v28  ;;  %4664 = vmatprep.subr.mxu1 %v875_v56  ;;  %v907_v7 = vsub.f32 %v731_v61, %v5557_v1  ;;  %v889_v8 = vand.u32 4294901760, %v888_v3  ;;  %v5572_v6 = vand.u32 4294901760, %v900_v0  ;;  %v5679_v61 = vand.u32 4294901760, %v1346_v58  ;;  %v1344_v3 = vld [vmem:[%s6404_s8 + $0x20] sm:$0xff] }
 0x2a3   :  { %v895_v9 = vsub.f32 %v5544_v55, %v5562_v4 }
 0x2a4   :  { %v902_v15 = vsub.f32 %v900_v0, %v5572_v6  ;;  %v5578_v18 = vand.u32 4294901760, %v907_v7 }
 0x2a5   :  { %4650 = vmatpush3.xpose.msra.mxu0 %v5517_v28  ;;  %4665 = vmatpush3.xpose.msra.mxu1 %v875_v56  ;;  %v896_v14 = vand.u32 4294901760, %v895_v9  ;;  %v1343_v9 = vld [vmem:[%s6404_s8 + $0x18] sm:$0xff] }
 0x2a6   :  { %4651 = vmatprep.subr.mxu0 %v5529_v35  ;;  %4666 = vmatprep.subr.mxu1 %v882_v2  ;;  %v903_v23 = vand.u32 4294901760, %v902_v15  ;;  %v909_v24 = vsub.f32 %v907_v7, %v5578_v18 }
 0x2a8   :  { %v910_v29 = vand.u32 4294901760, %v909_v24 }
 0x2a9   :  { %4652 = vmatpush3.xpose.msra.mxu0 %v5529_v35  ;;  %4667 = vmatpush3.xpose.msra.mxu1 %v882_v2 }
 0x2aa   :  { %4653 = vmatprep.subr.mxu0 %v5539_v52  ;;  %4668 = vmatprep.subr.mxu1 %v889_v8 }
 0x2ad   :  { %4654 = vmatpush3.xpose.msra.mxu0 %v5539_v52  ;;  %4669 = vmatpush3.xpose.msra.mxu1 %v889_v8  ;;  %v5707_v8 = vand.u32 4294901760, %v1344_v3 }
 0x2ae   :  { %4655 = vmatprep.subr.mxu0 %v5557_v1  ;;  %4670 = vmatprep.subr.mxu1 %v896_v14 }
 0x2af   :  { %v5722_v15 = vsub.f32 %v1344_v3, %v5707_v8 }
 0x2b1   :  { %4656 = vmatpush3.xpose.msra.mxu0 %v5557_v1  ;;  %4671 = vmatpush3.xpose.msra.mxu1 %v896_v14  ;;  %v5734_v24 = vand.u32 4294901760, %v5722_v15 }
 0x2b2   :  { %4672 = vmatprep.subr.mxu1 %v903_v23  ;;  %4679 = vmatprep.subr.mxu0 %v5485_v12 }
 0x2b4   :  { %4658 = vmatmul.mubr.f32.vlgmr.msra.gmra.mxu0 %v834_v25  ;;  %v5736_v25 = vand.u32 4294901760, %v1342_v20 }
 0x2b5   :  { %4673 = vmatpush3.xpose.msra.mxu1 %v903_v23  ;;  %4680 = vmatpush3.xpose.msra.mxu0 %v5485_v12 }
 0x2b6   :  { %4695 = vmatprep.mubr.f32.mxu0 %v5469_v60  ;;  %4674 = vmatprep.subr.mxu1 %v910_v29 }
 0x2b7   :  { %4681 = vmatprep.subr.mxu0 %v5493_v16 }
 0x2b9   :  { %4675 = vmatpush3.xpose.msra.mxu1 %v910_v29  ;;  %4682 = vmatpush3.xpose.msra.mxu0 %v5493_v16 }
 0x2ba   :  { %4683 = vmatprep.subr.mxu0 %v5503_v21  ;;  %4698 = vmatprep.subr.mxu1 %v5481_v11 }
 0x2bc   :  { %4677 = vmatmul.mubr.f32.vlgmr.msra.gmra.mxu1 %v5554_v63 }
 0x2bd   :  { %4684 = vmatpush3.xpose.msra.mxu0 %v5503_v21  ;;  %4699 = vmatpush3.xpose.msra.mxu1 %v5481_v11 }
 0x2be   :  { %4714 = vmatprep.mubr.f32.mxu1 %v822_v62  ;;  %4685 = vmatprep.subr.mxu0 %v5515_v27 }
 0x2bf   :  { %4700 = vmatprep.subr.mxu1 %v5487_v13 }
 0x2c1   :  { %4686 = vmatpush3.xpose.msra.mxu0 %v5515_v27  ;;  %4701 = vmatpush3.xpose.msra.mxu1 %v5487_v13 }
 0x2c2   :  { %4687 = vmatprep.subr.mxu0 %v5527_v34  ;;  %4702 = vmatprep.subr.mxu1 %v5495_v17 }
 0x2c5   :  { %4688 = vmatpush3.xpose.msra.mxu0 %v5527_v34  ;;  %4703 = vmatpush3.xpose.msra.mxu1 %v5495_v17 }
 0x2c6   :  { %4689 = vmatprep.subr.mxu0 %v5544_v55  ;;  %4704 = vmatprep.subr.mxu1 %v5505_v22 }
 0x2c9   :  { %4690 = vmatpush3.xpose.msra.mxu0 %v5544_v55  ;;  %4705 = vmatpush3.xpose.msra.mxu1 %v5505_v22  ;;  %v1347_v55 = vld [vmem:[%s6404_s8 + $0x38] sm:$0xff] }
 0x2ca   :  { %4691 = vmatprep.subr.mxu0 %v900_v0  ;;  %4706 = vmatprep.subr.mxu1 %v5517_v28  ;;  %v5671_v56 = vand.u32 4294901760, %v1347_v55 }
 0x2cd   :  { %4692 = vmatpush3.xpose.msra.mxu0 %v900_v0  ;;  %4707 = vmatpush3.xpose.msra.mxu1 %v5517_v28 }
 0x2ce   :  { %4693 = vmatprep.subr.mxu0 %v907_v7  ;;  %4708 = vmatprep.subr.mxu1 %v5529_v35 }
 0x2d1   :  { %4694 = vmatpush3.xpose.msra.mxu0 %v907_v7  ;;  %4709 = vmatpush3.xpose.msra.mxu1 %v5529_v35 }
 0x2d2   :  { %4710 = vmatprep.subr.mxu1 %v5539_v52  ;;  %4717 = vmatprep.subr.mxu0 %v5499_v19 }
 0x2d4   :  { %4696 = vmatmul.mubr.f32.vlgmr.msra.gmra.mxu0 %v5567_v5 }
 0x2d5   :  { %4711 = vmatpush3.xpose.msra.mxu1 %v5539_v52  ;;  %4718 = vmatpush3.xpose.msra.mxu0 %v5499_v19 }
 0x2d6   :  { %4733 = vmatprep.mubr.f32.mxu0 %v5464_v57  ;;  %4712 = vmatprep.subr.mxu1 %v5557_v1 }
 0x2d7   :  { %4719 = vmatprep.subr.mxu0 %v5510_v26 }
 0x2d9   :  { %4713 = vmatpush3.xpose.msra.mxu1 %v5557_v1  ;;  %4720 = vmatpush3.xpose.msra.mxu0 %v5510_v26 }
 0x2da   :  { %4721 = vmatprep.subr.mxu0 %v5524_v33  ;;  %4736 = vmatprep.subr.mxu1 %v5481_v11 }
 0x2dc   :  { %4715 = vmatmul.mubr.f32.vlgmr.msra.gmra.mxu1 %v832_v10 }
 0x2dd   :  { %4722 = vmatpush3.xpose.msra.mxu0 %v5524_v33  ;;  %4737 = vmatpush3.xpose.msra.mxu1 %v5481_v11  ;;  %v700_v11 = vld [vmem:[%s6403_s7 + $0x8] sm:$0xff] }
 0x2de   :  { %4752 = vmatprep.mubr.f32.mxu1 %v5464_v57  ;;  %4723 = vmatprep.subr.mxu0 %v5532_v46 }
 0x2df   :  { %4738 = vmatprep.subr.mxu1 %v5487_v13 }
 0x2e1   :  { %4724 = vmatpush3.xpose.msra.mxu0 %v5532_v46  ;;  %4739 = vmatpush3.xpose.msra.mxu1 %v5487_v13  ;;  %v699_v13 = vld [vmem:[%s6403_s7] sm:$0xff] }
 0x2e2   :  { %4725 = vmatprep.subr.mxu0 %v5549_v59  ;;  %4740 = vmatprep.subr.mxu1 %v5495_v17 }
 0x2e5   :  { %4726 = vmatpush3.xpose.msra.mxu0 %v5549_v59  ;;  %4741 = vmatpush3.xpose.msra.mxu1 %v5495_v17  ;;  %v5677_v59 = vsub.f32 %v1347_v55, %v5671_v56 }
 0x2e6   :  { %4727 = vmatprep.subr.mxu0 %v5562_v4  ;;  %4742 = vmatprep.subr.mxu1 %v5505_v22 }
 0x2e7   :  { %v5687_v0 = vand.u32 4294901760, %v5677_v59 }
 0x2e9   :  { %4728 = vmatpush3.xpose.msra.mxu0 %v5562_v4  ;;  %4743 = vmatpush3.xpose.msra.mxu1 %v5505_v22  ;;  %v1467_v4 = vsub.f32 %v5677_v59, %v5687_v0 }
 0x2ea   :  { %4729 = vmatprep.subr.mxu0 %v5572_v6  ;;  %4744 = vmatprep.subr.mxu1 %v5517_v28 }
 0x2ed   :  { %4730 = vmatpush3.xpose.msra.mxu0 %v5572_v6  ;;  %4745 = vmatpush3.xpose.msra.mxu1 %v5517_v28  ;;  %v1468_v6 = vand.u32 4294901760, %v1467_v4 }
 0x2ee   :  { %4731 = vmatprep.subr.mxu0 %v5578_v18  ;;  %4746 = vmatprep.subr.mxu1 %v5529_v35 }
 0x2f1   :  { %4732 = vmatpush3.xpose.msra.mxu0 %v5578_v18  ;;  %4747 = vmatpush3.xpose.msra.mxu1 %v5529_v35  ;;  %v5725_v18 = vand.u32 4294901760, %v1343_v9 }
 0x2f2   :  { %4748 = vmatprep.subr.mxu1 %v5539_v52  ;;  %4755 = vmatprep.subr.mxu0 %v5671_v56 }
 0x2f3   :  { %v5739_v29 = vsub.f32 %v1343_v9, %v5725_v18 }
 0x2f4   :  { %4734 = vmatmul.mubr.f32.vlgmr.msra.gmra.mxu0 %v5554_v63 }
 0x2f5   :  { %4749 = vmatpush3.xpose.msra.mxu1 %v5539_v52  ;;  %4756 = vmatpush3.msra.mxu0 %v5671_v56 }
 0x2f6   :  { %4750 = vmatprep.subr.mxu1 %v5557_v1  ;;  %4757 = vmatprep.subr.mxu0 %v5679_v61 }
 0x2f7   :  { %4758 = vmatpush3.msra.mxu0 %v5679_v61 }
 0x2f9   :  { %4751 = vmatpush3.xpose.msra.mxu1 %v5557_v1  ;;  %v5690_v1 = vsub.f32 %v1346_v58, %v5679_v61 }
 0x2fa   :  { %4774 = vmatprep.subr.mxu1 %v1468_v6 }
 0x2fb   :  { %v5702_v5 = vand.u32 4294901760, %v5690_v1 }
 0x2fc   :  { %4753 = vmatmul.mubr.f32.vlgmr.msra.gmra.mxu1 %v5554_v63  ;;  %v1345_v63 = vld [vmem:[%s6404_s8 + $0x28] sm:$0xff] }
 0x2fd   :  { %v5692_v2 = vand.u32 4294901760, %v1345_v63  ;;  %v1474_v10 = vsub.f32 %v5690_v1, %v5702_v5  ;;  %4775 = vmatpush3.msra.mxu1 %v1468_v6 }
 0x2ff   :  { %v5705_v7 = vsub.f32 %v1345_v63, %v5692_v2  ;;  %4759 = vmatprep.subr.mxu0 %v5692_v2 }
 0x300   :  { %4760 = vmatpush3.msra.mxu0 %v5692_v2 }
 0x301   :  { %v5719_v14 = vand.u32 4294901760, %v5705_v7  ;;  %4761 = vmatprep.subr.mxu0 %v5707_v8 }
 0x302   :  { %4762 = vmatpush3.msra.mxu0 %v5707_v8 }
 0x303   :  { %v1481_v23 = vsub.f32 %v5705_v7, %v5719_v14  ;;  %4763 = vmatprep.subr.mxu0 %v5725_v18 }
 0x304   :  { %4764 = vmatpush3.msra.mxu0 %v5725_v18 }
 0x305   :  { %4765 = vmatprep.subr.mxu0 %v5736_v25 }
 0x306   :  { %4766 = vmatpush3.msra.mxu0 %v5736_v25 }
 0x374   :  { %v4659_v57 = vpop.f32.mrf.mxu0 }
 0x375   :  { %v837_v17 = vadd.f32 %v4659_v57, %v700_v11  ;;  %v1341_v57 = vld [vmem:[%s6404_s8 + $0x8] sm:$0xff]  ;;  %v5750_v11 = vsub.f32 %v1342_v20, %v5736_v25 }
 0x376   :  { %v826_v60 = vpop.f32.mrf.mxu0 }
 0x377   :  { %v827_v22 = vadd.f32 %v826_v60, %v699_v13  ;;  %v1482_v60 = vand.u32 4294901760, %v1481_v23  ;;  %v5755_v13 = vand.u32 4294901760, %v5739_v29 }
 0x37c   :  { %v4678_v62 = vpop.f32.mrf.mxu1 }
 0x37d   :  { %v954_v26 = vadd.f32 %v4678_v62, %v837_v17  ;;  %v1488_v62 = vsub.f32 %v5722_v15, %v5734_v24  ;;  %v5762_v17 = vand.u32 4294901760, %v5750_v11 }
 0x37e   :  { %v947_v16 = vpop.f32.mrf.mxu1 }
 0x37f   :  { %v948_v28 = vadd.f32 %v947_v16, %v827_v22  ;;  %v1340_v16 = vld [vmem:[%s6404_s8] sm:$0xff]  ;;  %v1495_v22 = vsub.f32 %v5739_v29, %v5755_v13 }
 0x394   :  { %v4697_v12 = vpop.f32.mrf.mxu0 }
 0x395   :  { %v1049_v30 = vadd.f32 %v4697_v12, %v954_v26  ;;  %v5752_v12 = vand.u32 4294901760, %v1341_v57  ;;  %v1502_v26 = vsub.f32 %v5750_v11, %v5762_v17 }
 0x396   :  { %v1041_v19 = vpop.f32.mrf.mxu0 }
 0x397   :  { %v1042_v32 = vadd.f32 %v1041_v19, %v948_v28  ;;  %v5765_v19 = vsub.f32 %v1341_v57, %v5752_v12  ;;  %4767 = vmatprep.subr.mxu0 %v5752_v12 }
 0x398   :  { %4768 = vmatpush3.msra.mxu0 %v5752_v12 }
 0x39c   :  { %v4716_v21 = vpop.f32.mrf.mxu1 }
 0x39d   :  { %v1138_v33 = vadd.f32 %v4716_v21, %v1049_v30  ;;  %v5767_v21 = vand.u32 4294901760, %v1340_v16  ;;  %v1496_v30 = vand.u32 4294901760, %v1495_v22 }
 0x39e   :  { %v1129_v31 = vpop.f32.mrf.mxu1 }
 0x39f   :  { %v1130_v35 = vadd.f32 %v1129_v31, %v1042_v32  ;;  %v5782_v28 = vsub.f32 %v1340_v16, %v5767_v21  ;;  %4769 = vmatprep.subr.mxu0 %v5767_v21 }
 0x3a0   :  { %4770 = vmatpush3.msra.mxu0 %v5767_v21 }
 0x3a1   :  { %4793 = vmatprep.subr.mxu0 %v5677_v59 }
 0x3b4   :  { %v4735_v27 = vpop.f32.mrf.mxu0 }
 0x3b5   :  { %v1239_v36 = vadd.f32 %v4735_v27, %v1138_v33  ;;  %v5779_v27 = vand.u32 4294901760, %v5765_v19 }
 0x3b6   :  { %v1232_v34 = vpop.f32.mrf.mxu0 }
 0x3b7   :  { %v1233_v46 = vadd.f32 %v1232_v34, %v1130_v35  ;;  %v1509_v31 = vsub.f32 %v5765_v19, %v5779_v27 }
 0x3b9   :  { %v1510_v32 = vand.u32 4294901760, %v1509_v31 }
 0x3bc   :  { %v4754_v37 = vpop.f32.mrf.mxu1 }
 0x3bd   :  { %v5660_v48 = vadd.f32 %v4754_v37, %v1239_v36 }
 0x3be   :  { %v1317_v49 = vpop.f32.mrf.mxu1 }
 0x3bf   :  { %v5662_v50 = vadd.f32 %v1317_v49, %v1233_v46  ;;  %v1331_v52 = vsel %vm1327_vm1, %v5660_v48, -inf }
 0x3c0   :  { %1332 = vmax.xlane.f32.xlu1 %v1331_v52 }
 0x3c1   :  { %v1328_v54 = vsel %vm1327_vm1, %v5662_v50, -inf }
 0x3c2   :  { %1329 = vmax.xlane.f32.xlu0 %v1328_v54 }
 0x3d1   :  { %679 = vrot.lane.b32.xlu1 %v5367_v38, %s5230_s12  ;;  %v1475_v38 = vand.u32 4294901760, %v1474_v10 }
 0x3d3   :  { %4776 = vmatprep.subr.mxu1 %v1475_v38 }
 0x3d4   :  { %4777 = vmatpush3.msra.mxu1 %v1475_v38 }
 0x3d5   :  { %675 = vrot.lane.b32.xlu1 %v5391_v42, %s5230_s12  ;;  %4778 = vmatprep.subr.mxu1 %v1482_v60  ;;  %v1489_v42 = vand.u32 4294901760, %v1488_v62 }
 0x3d6   :  { %4779 = vmatpush3.msra.mxu1 %v1482_v60 }
 0x3d7   :  { %4780 = vmatprep.subr.mxu1 %v1489_v42 }
 0x3d8   :  { %681 = vrot.lane.b32.xlu0 %v5372_v39, %s5230_s12  ;;  %4781 = vmatpush3.msra.mxu1 %v1489_v42  ;;  %v1503_v39 = vand.u32 4294901760, %v1502_v26 }
 0x3d9   :  { %671 = vrot.lane.b32.xlu1 %v5403_v44, %s5230_s12  ;;  %v5788_v44 = vand.u32 4294901760, %v5782_v28  ;;  %4782 = vmatprep.subr.mxu1 %v1496_v30 }
 0x3da   :  { %4783 = vmatpush3.msra.mxu1 %v1496_v30 }
 0x3db   :  { %v1516_v33 = vsub.f32 %v5782_v28, %v5788_v44  ;;  %4784 = vmatprep.subr.mxu1 %v1503_v39 }
 0x3dc   :  { %677 = vrot.lane.b32.xlu0 %v5379_v40, %s5230_s12  ;;  %4785 = vmatpush3.msra.mxu1 %v1503_v39 }
 0x3dd   :  { %667 = vrot.lane.b32.xlu1 %v5409_v45, %s5230_s12  ;;  %v1517_v34 = vand.u32 4294901760, %v1516_v33  ;;  %4786 = vmatprep.subr.mxu1 %v1510_v32 }
 0x3de   :  { %4787 = vmatpush3.msra.mxu1 %v1510_v32 }
 0x3df   :  { %4788 = vmatprep.subr.mxu1 %v1517_v34 }
 0x3e0   :  { %673 = vrot.lane.b32.xlu0 %v5384_v41, %s5230_s12  ;;  %4789 = vmatpush3.msra.mxu1 %v1517_v34 }
 0x3e1   :  { %4812 = vmatprep.subr.mxu1 %v5671_v56 }
 0x3e4   :  { %669 = vrot.lane.b32.xlu0 %v5396_v43, %s5230_s12 }
 0x449   :  { %v1333_v40 = vpop.xlane.xlu1 %1332 }
 0x44a   :  { %v1335_v45 = vsub.f32 %v5660_v48, %v1333_v40 }
 0x44b   :  { %v1330_v35 = vpop.xlane.xlu0 %1329 }
 0x44c   :  { %v1338_v36 = vmul.f32 1.442695, %v1335_v45  ;;  %v1334_v41 = vsub.f32 %v5662_v50, %v1330_v35 }
 0x44d   :  { %v680_v37 = vpop.permute.xlu1 %679 }
 0x44e   :  { %5191 = vpow2.f32 %v1338_v36  ;;  %v1336_v46 = vmul.f32 1.442695, %v1334_v41  ;;  %v697_v49 = vmul.f32 %v680_v37, %v5458_v51 }
 0x44f   :  { %v682_v52 = vpop.permute.xlu0 %681 }
 0x450   :  { %5193 = vpow2.f32 %v1336_v46  ;;  %v698_v54 = vmul.f32 %v682_v52, %v5456_v47  ;;  %1958 = vrot.lane.b32.xlu1 %v697_v49, %s5230_s12 }
 0x451   :  { %v676_v43 = vpop.permute.xlu1 %675 }
 0x452   :  { %v695_v55 = vmul.f32 %v676_v43, %v5458_v51  ;;  %1960 = vrot.lane.b32.xlu0 %v698_v54, %s5230_s12 }
 0x453   :  { %v678_v48 = vpop.permute.xlu0 %677 }
 0x454   :  { %v696_v58 = vmul.f32 %v678_v48, %v5456_v47  ;;  %1954 = vrot.lane.b32.xlu1 %v695_v55, %s5230_s12 }
 0x455   :  { %v672_v50 = vpop.permute.xlu1 %671 }
 0x456   :  { %v693_v63 = vmul.f32 %v672_v50, %v5458_v51  ;;  %1956 = vrot.lane.b32.xlu0 %v696_v58, %s5230_s12 }
 0x457   :  { %v674_v3 = vpop.permute.xlu0 %673 }
 0x458   :  { %v694_v4 = vmul.f32 %v674_v3, %v5456_v47  ;;  %1950 = vrot.lane.b32.xlu1 %v693_v63, %s5230_s12 }
 0x459   :  { %v668_v9 = vpop.permute.xlu1 %667 }
 0x45a   :  { %v691_v6 = vmul.f32 %v668_v9, %v5458_v51  ;;  %1952 = vrot.lane.b32.xlu0 %v694_v4, %s5230_s12 }
 0x45b   :  { %v5821_v10 = vpop.eup %5191  ;;  %v670_v20 = vpop.permute.xlu0 %669 }
 0x45c   :  { %v692_v38 = vmul.f32 %v670_v20, %v5456_v47  ;;  %1946 = vrot.lane.b32.xlu1 %v691_v6, %s5230_s12  ;;  %v1352_v23 = vsel %vm1327_vm1, %v5821_v10, 0 }
 0x45d   :  { %v5827_v57 = vpop.eup %5193  ;;  %v5829_v60 = vand.u32 4294901760, %v1352_v23 }
 0x45e   :  { %1948 = vrot.lane.b32.xlu0 %v692_v38, %s5230_s12  ;;  %v1349_v51 = vsel %vm1327_vm1, %v5827_v57, 0 }
 0x45f   :  { %v1427_v62 = vand.u32 4294901760, %v1349_v51  ;;  %v1438_v16 = vsub.f32 %v1352_v23, %v5829_v60 }
 0x461   :  { %4790 = vmatprep.mubr.f32.mxu1 %v1427_v62  ;;  %v1428_v42 = vsub.f32 %v1349_v51, %v1427_v62  ;;  %v1439_v47 = vand.u32 4294901760, %v1438_v16 }
 0x462   :  { %4791 = vmatmul.mubr.f32.vlgmr.msra.gmra.mxu1 %v5829_v60 }
 0x463   :  { %4813 = vmatpush3.msra.mxu1 %v5671_v56  ;;  %v1429_v22 = vand.u32 4294901760, %v1428_v42  ;;  %v1440_v26 = vsub.f32 %v1438_v16, %v1439_v47 }
 0x464   :  { %4814 = vmatprep.subr.mxu1 %v5679_v61 }
 0x465   :  { %4815 = vmatpush3.msra.mxu1 %v5679_v61  ;;  %4828 = vmatprep.mubr.f32.mxu1 %v1429_v22  ;;  %v1430_v30 = vsub.f32 %v1428_v42, %v1429_v22  ;;  %v1441_v31 = vand.u32 4294901760, %v1440_v26 }
 0x466   :  { %4816 = vmatprep.subr.mxu1 %v5692_v2 }
 0x467   :  { %4817 = vmatpush3.msra.mxu1 %v5692_v2  ;;  %v1431_v39 = vand.u32 4294901760, %v1430_v30 }
 0x468   :  { %4818 = vmatprep.subr.mxu1 %v5707_v8 }
 0x469   :  { %4819 = vmatpush3.msra.mxu1 %v5707_v8  ;;  %4771 = vmatprep.mubr.f32.mxu0 %v1431_v39 }
 0x46a   :  { %4820 = vmatprep.subr.mxu1 %v5725_v18  ;;  %4772 = vmatmul.mubr.f32.vlgmr.msra.gmra.mxu0 %v1441_v31 }
 0x46b   :  { %4794 = vmatpush3.msra.mxu0 %v5677_v59  ;;  %4821 = vmatpush3.msra.mxu1 %v5725_v18 }
 0x46c   :  { %4795 = vmatprep.subr.mxu0 %v5690_v1  ;;  %4809 = vmatprep.mubr.f32.mxu0 %v1428_v42 }
 0x46d   :  { %4822 = vmatprep.subr.mxu1 %v5736_v25  ;;  %4796 = vmatpush3.msra.mxu0 %v5690_v1 }
 0x46e   :  { %4823 = vmatpush3.msra.mxu1 %v5736_v25  ;;  %4797 = vmatprep.subr.mxu0 %v5705_v7 }
 0x46f   :  { %4824 = vmatprep.subr.mxu1 %v5752_v12  ;;  %4798 = vmatpush3.msra.mxu0 %v5705_v7 }
 0x470   :  { %4825 = vmatpush3.msra.mxu1 %v5752_v12  ;;  %4799 = vmatprep.subr.mxu0 %v5722_v15 }
 0x471   :  { %4826 = vmatprep.subr.mxu1 %v5767_v21  ;;  %4800 = vmatpush3.msra.mxu0 %v5722_v15 }
 0x472   :  { %4827 = vmatpush3.msra.mxu1 %v5767_v21  ;;  %4801 = vmatprep.subr.mxu0 %v5739_v29 }
 0x473   :  { %4829 = vmatmul.mubr.f32.vlgmr.msra.gmra.mxu1 %v1439_v47  ;;  %4850 = vmatprep.subr.mxu1 %v5671_v56 }
 0x474   :  { %4802 = vmatpush3.msra.mxu0 %v5739_v29  ;;  %4851 = vmatpush3.msra.mxu1 %v5671_v56 }
 0x475   :  { %4866 = vmatprep.mubr.f32.mxu1 %v1427_v62  ;;  %4803 = vmatprep.subr.mxu0 %v5750_v11 }
 0x476   :  { %4852 = vmatprep.subr.mxu1 %v5679_v61  ;;  %4804 = vmatpush3.msra.mxu0 %v5750_v11 }
 0x477   :  { %4853 = vmatpush3.msra.mxu1 %v5679_v61  ;;  %4805 = vmatprep.subr.mxu0 %v5765_v19 }
 0x478   :  { %4854 = vmatprep.subr.mxu1 %v5692_v2  ;;  %4806 = vmatpush3.msra.mxu0 %v5765_v19 }
 0x479   :  { %4855 = vmatpush3.msra.mxu1 %v5692_v2  ;;  %4807 = vmatprep.subr.mxu0 %v5782_v28 }
 0x47a   :  { %4856 = vmatprep.subr.mxu1 %v5707_v8  ;;  %4808 = vmatpush3.msra.mxu0 %v5782_v28 }
 0x47b   :  { %4857 = vmatpush3.msra.mxu1 %v5707_v8  ;;  %4810 = vmatmul.mubr.f32.vlgmr.msra.gmra.mxu0 %v1438_v16 }
 0x47c   :  { %4831 = vmatprep.subr.mxu0 %v5687_v0  ;;  %4858 = vmatprep.subr.mxu1 %v5725_v18 }
 0x47d   :  { %4832 = vmatpush3.msra.mxu0 %v5687_v0  ;;  %4847 = vmatprep.mubr.f32.mxu0 %v1427_v62 }
 0x47e   :  { %4859 = vmatpush3.msra.mxu1 %v5725_v18  ;;  %4833 = vmatprep.subr.mxu0 %v5702_v5 }
 0x47f   :  { %4860 = vmatprep.subr.mxu1 %v5736_v25  ;;  %4834 = vmatpush3.msra.mxu0 %v5702_v5 }
 0x480   :  { %4861 = vmatpush3.msra.mxu1 %v5736_v25  ;;  %4835 = vmatprep.subr.mxu0 %v5719_v14 }
 0x481   :  { %4862 = vmatprep.subr.mxu1 %v5752_v12  ;;  %4836 = vmatpush3.msra.mxu0 %v5719_v14 }
 0x482   :  { %4863 = vmatpush3.msra.mxu1 %v5752_v12  ;;  %4837 = vmatprep.subr.mxu0 %v5734_v24 }
 0x483   :  { %4864 = vmatprep.subr.mxu1 %v5767_v21  ;;  %4838 = vmatpush3.msra.mxu0 %v5734_v24 }
 0x484   :  { %4865 = vmatpush3.msra.mxu1 %v5767_v21  ;;  %4839 = vmatprep.subr.mxu0 %v5755_v13 }
 0x485   :  { %4867 = vmatmul.mubr.f32.vlgmr.msra.gmra.mxu1 %v5829_v60  ;;  %4840 = vmatpush3.msra.mxu0 %v5755_v13 }
 0x486   :  { %4841 = vmatprep.subr.mxu0 %v5762_v17 }
 0x487   :  { %4842 = vmatpush3.msra.mxu0 %v5762_v17 }
 0x488   :  { %4843 = vmatprep.subr.mxu0 %v5779_v27 }
 0x489   :  { %4844 = vmatpush3.msra.mxu0 %v5779_v27 }
 0x48a   :  { %4845 = vmatprep.subr.mxu0 %v5788_v44 }
 0x48b   :  { %4846 = vmatpush3.msra.mxu0 %v5788_v44 }
 0x48c   :  { %4848 = vmatmul.mubr.f32.vlgmr.msra.gmra.mxu0 %v5829_v60 }
 0x4c2   :  { %v1959_v56 = vpop.permute.xlu1 %1958 }
 0x4c3   :  { %v5900_v59 = vand.u32 4294901760, %v1959_v56 }
 0x4c4   :  { %v1961_v61 = vpop.permute.xlu0 %1960 }
 0x4c5   :  { %v5903_v0 = vsub.f32 %v1959_v56, %v5900_v59  ;;  %v5905_v1 = vand.u32 4294901760, %v1961_v61 }
 0x4c6   :  { %v1955_v2 = vpop.permute.xlu1 %1954 }
 0x4c7   :  { %v5908_v5 = vsub.f32 %v1961_v61, %v5905_v1  ;;  %v5910_v7 = vand.u32 4294901760, %v1955_v2  ;;  %4869 = vmatprep.subr.mxu0 %v5905_v1  ;;  %v5914_v8 = vand.u32 4294901760, %v5903_v0 }
 0x4c8   :  { %4870 = vmatpush3.msra.mxu0 %v5905_v1  ;;  %v1957_v14 = vpop.permute.xlu0 %1956 }
 0x4c9   :  { %v5918_v15 = vsub.f32 %v1955_v2, %v5910_v7  ;;  %v5920_v18 = vand.u32 4294901760, %v1957_v14  ;;  %4871 = vmatprep.subr.mxu0 %v5900_v59  ;;  %v5924_v24 = vand.u32 4294901760, %v5908_v5  ;;  %v2096_v29 = vsub.f32 %v5903_v0, %v5914_v8 }
 0x4ca   :  { %v1951_v25 = vpop.permute.xlu1 %1950  ;;  %4872 = vmatpush3.msra.mxu0 %v5900_v59 }
 0x4cb   :  { %v5930_v11 = vsub.f32 %v1957_v14, %v5920_v18  ;;  %v5932_v12 = vand.u32 4294901760, %v1951_v25  ;;  %4873 = vmatprep.subr.mxu0 %v5920_v18  ;;  %v2089_v13 = vsub.f32 %v5908_v5, %v5924_v24  ;;  %v5939_v19 = vand.u32 4294901760, %v5918_v15 }
 0x4cc   :  { %4874 = vmatpush3.msra.mxu0 %v5920_v18  ;;  %v1953_v17 = vpop.permute.xlu0 %1952  ;;  %v2097_v33 = vand.u32 4294901760, %v2096_v29 }
 0x4cd   :  { %v5942_v21 = vsub.f32 %v1951_v25, %v5932_v12  ;;  %v5944_v27 = vand.u32 4294901760, %v1953_v17  ;;  %4875 = vmatprep.subr.mxu0 %v5910_v7  ;;  %v2090_v28 = vand.u32 4294901760, %v2089_v13  ;;  %v5948_v44 = vand.u32 4294901760, %v5930_v11 }
 0x4ce   :  { %v1947_v32 = vpop.permute.xlu1 %1946  ;;  %4876 = vmatpush3.msra.mxu0 %v5910_v7  ;;  %v2110_v34 = vsub.f32 %v5918_v15, %v5939_v19 }
 0x4cf   :  { %v5954_v40 = vsub.f32 %v1953_v17, %v5944_v27  ;;  %v5956_v45 = vand.u32 4294901760, %v1947_v32  ;;  %4877 = vmatprep.subr.mxu0 %v5944_v27  ;;  %4888 = vmatprep.subr.mxu1 %v2090_v28  ;;  %v2103_v35 = vsub.f32 %v5930_v11, %v5948_v44  ;;  %v5962_v36 = vand.u32 4294901760, %v5942_v21 }
 0x4d0   :  { %4878 = vmatpush3.msra.mxu0 %v5944_v27  ;;  %4889 = vmatpush3.msra.mxu1 %v2090_v28  ;;  %v1949_v41 = vpop.permute.xlu0 %1948  ;;  %v2111_v54 = vand.u32 4294901760, %v2110_v34 }
 0x4d1   :  { %v5966_v37 = vsub.f32 %v1947_v32, %v5956_v45  ;;  %v5968_v46 = vand.u32 4294901760, %v1949_v41  ;;  %4879 = vmatprep.subr.mxu0 %v5932_v12  ;;  %4890 = vmatprep.subr.mxu1 %v2097_v33  ;;  %v2104_v49 = vand.u32 4294901760, %v2103_v35  ;;  %v5972_v52 = vand.u32 4294901760, %v5954_v40 }
 0x4d2   :  { %4880 = vmatpush3.msra.mxu0 %v5932_v12  ;;  %4891 = vmatpush3.msra.mxu1 %v2097_v33  ;;  %v2124_v48 = vsub.f32 %v5942_v21, %v5962_v36 }
 0x4d3   :  { %v5976_v43 = vsub.f32 %v1949_v41, %v5968_v46  ;;  %4881 = vmatprep.subr.mxu0 %v5968_v46  ;;  %4892 = vmatprep.subr.mxu1 %v2104_v49  ;;  %v2117_v55 = vsub.f32 %v5954_v40, %v5972_v52  ;;  %v5984_v58 = vand.u32 4294901760, %v5966_v37 }
 0x4d4   :  { %4882 = vmatpush3.msra.mxu0 %v5968_v46  ;;  %4893 = vmatpush3.msra.mxu1 %v2104_v49  ;;  %v2125_v3 = vand.u32 4294901760, %v2124_v48 }
 0x4d5   :  { %4883 = vmatprep.subr.mxu0 %v5956_v45  ;;  %4894 = vmatprep.subr.mxu1 %v2111_v54  ;;  %v2118_v50 = vand.u32 4294901760, %v2117_v55  ;;  %v5989_v63 = vand.u32 4294901760, %v5976_v43  ;;  %v2138_v9 = vsub.f32 %v5966_v37, %v5984_v58 }
 0x4d6   :  { %4884 = vmatpush3.msra.mxu0 %v5956_v45  ;;  %4895 = vmatpush3.msra.mxu1 %v2111_v54 }
 0x4d7   :  { %4896 = vmatprep.subr.mxu1 %v2118_v50  ;;  %4907 = vmatprep.subr.mxu0 %v5908_v5  ;;  %v2131_v4 = vsub.f32 %v5976_v43, %v5989_v63  ;;  %v2139_v20 = vand.u32 4294901760, %v2138_v9 }
 0x4d8   :  { %4897 = vmatpush3.msra.mxu1 %v2118_v50 }
 0x4d9   :  { %4898 = vmatprep.subr.mxu1 %v2125_v3  ;;  %v2132_v6 = vand.u32 4294901760, %v2131_v4 }
 0x4da   :  { %4899 = vmatpush3.msra.mxu1 %v2125_v3 }
 0x4db   :  { %4900 = vmatprep.subr.mxu1 %v2132_v6 }
 0x4dc   :  { %4901 = vmatpush3.msra.mxu1 %v2132_v6 }
 0x4dd   :  { %4902 = vmatprep.subr.mxu1 %v2139_v20 }
 0x4de   :  { %4903 = vmatpush3.msra.mxu1 %v2139_v20 }
 0x4df   :  { %4926 = vmatprep.subr.mxu1 %v5905_v1 }
 0x522   :  { %v4792_v23 = vpop.f32.mrf.mxu1 }
 0x524   :  { %v1554_v62 = vpop.f32.mrf.mxu1 }
 0x52a   :  { %v4773_v38 = vpop.f32.mrf.mxu0 }
 0x52b   :  { %v1561_v16 = vadd.f32 %v4792_v23, %v4773_v38 }
 0x52c   :  { %v1433_v60 = vpop.f32.mrf.mxu0 }
 0x52d   :  { %v1555_v22 = vadd.f32 %v1554_v62, %v1433_v60 }
 0x533   :  { %v4830_v42 = vpop.f32.mrf.mxu1 }
 0x535   :  { %v1736_v39 = vpop.f32.mrf.mxu1 }
 0x53b   :  { %v4811_v51 = vpop.f32.mrf.mxu0 }
 0x53c   :  { %v1656_v26 = vadd.f32 %v4811_v51, %v1561_v16 }
 0x53d   :  { %v1648_v47 = vpop.f32.mrf.mxu0 }
 0x53e   :  { %v1649_v30 = vadd.f32 %v1648_v47, %v1555_v22  ;;  %v1745_v31 = vadd.f32 %v4830_v42, %v1656_v26 }
 0x540   :  { %v1737_v14 = vadd.f32 %v1736_v39, %v1649_v30 }
 0x545   :  { %v4868_v56 = vpop.f32.mrf.mxu1 }
 0x547   :  { %v1924_v17 = vpop.f32.mrf.mxu1 }
 0x54c   :  { %v4849_v61 = vpop.f32.mrf.mxu0 }
 0x54d   :  { %v1846_v2 = vadd.f32 %v4849_v61, %v1745_v31 }
 0x54e   :  { %v1839_v25 = vpop.f32.mrf.mxu0 }
 0x54f   :  { %v1931_v29 = vadd.f32 %v4868_v56, %v1846_v2  ;;  %v1840_v13 = vadd.f32 %v1839_v25, %v1737_v14 }
 0x551   :  { %5195 = vrcp.f32 %v1931_v29  ;;  %v1925_v28 = vadd.f32 %v1924_v17, %v1840_v13 }
 0x553   :  { %5197 = vrcp.f32 %v1925_v28 }
 0x55e   :  { %v5196_v32 = vpop.eup %5195 }
 0x55f   :  { %v1937_v33 = vmul.f32 %v5196_v32, %v5821_v10 }
 0x560   :  { %v5198_v34 = vpop.eup %5197 }
 0x561   :  { %v1936_v35 = vmul.f32 %v5198_v34, %v5827_v57  ;;  %v1974_v41 = vsel %vm1327_vm1, %v1937_v33, 0 }
 0x562   :  { %v6001_v49 = vand.u32 4294901760, %v1974_v41 }
 0x563   :  { %v1971_v54 = vsel %vm1327_vm1, %v1936_v35, 0 }
 0x564   :  { %v2049_v55 = vand.u32 4294901760, %v1971_v54  ;;  %v2060_v48 = vsub.f32 %v1974_v41, %v6001_v49 }
 0x566   :  { %4904 = vmatprep.mubr.f32.mxu1 %v2049_v55  ;;  %v2050_v50 = vsub.f32 %v1971_v54, %v2049_v55  ;;  %v2061_v3 = vand.u32 4294901760, %v2060_v48 }
 0x567   :  { %4905 = vmatmul.mubr.f32.vlgmr.msra.gmra.mxu1 %v6001_v49 }
 0x568   :  { %4927 = vmatpush3.msra.mxu1 %v5905_v1  ;;  %v2051_v10 = vand.u32 4294901760, %v2050_v50  ;;  %v2062_v57 = vsub.f32 %v2060_v48, %v2061_v3 }
 0x569   :  { %4928 = vmatprep.subr.mxu1 %v5900_v59 }
 0x56a   :  { %4929 = vmatpush3.msra.mxu1 %v5900_v59  ;;  %4942 = vmatprep.mubr.f32.mxu1 %v2051_v10  ;;  %v2052_v4 = vsub.f32 %v2050_v50, %v2051_v10  ;;  %v2063_v6 = vand.u32 4294901760, %v2062_v57  ;;  %v4248_v57 = vld [vmem:[%s6399_s3 + $0x20] ss:$0 sm:$0xff] }
 0x56b   :  { %4930 = vmatprep.subr.mxu1 %v5920_v18 }
 0x56c   :  { %4931 = vmatpush3.msra.mxu1 %v5920_v18  ;;  %v2053_v9 = vand.u32 4294901760, %v2052_v4 }
 0x56d   :  { %4932 = vmatprep.subr.mxu1 %v5910_v7 }
 0x56e   :  { %4933 = vmatpush3.msra.mxu1 %v5910_v7  ;;  %4885 = vmatprep.mubr.f32.mxu0 %v2053_v9 }
 0x56f   :  { %4934 = vmatprep.subr.mxu1 %v5944_v27  ;;  %4886 = vmatmul.mubr.f32.vlgmr.msra.gmra.mxu0 %v2063_v6 }
 0x570   :  { %4908 = vmatpush3.msra.mxu0 %v5908_v5  ;;  %4935 = vmatpush3.msra.mxu1 %v5944_v27 }
 0x571   :  { %4909 = vmatprep.subr.mxu0 %v5903_v0  ;;  %4923 = vmatprep.mubr.f32.mxu0 %v2050_v50 }
 0x572   :  { %4936 = vmatprep.subr.mxu1 %v5932_v12  ;;  %4910 = vmatpush3.msra.mxu0 %v5903_v0 }
 0x573   :  { %4937 = vmatpush3.msra.mxu1 %v5932_v12  ;;  %4911 = vmatprep.subr.mxu0 %v5930_v11 }
 0x574   :  { %4938 = vmatprep.subr.mxu1 %v5968_v46  ;;  %4912 = vmatpush3.msra.mxu0 %v5930_v11  ;;  %v2556_v11 = vld [vmem:[%s6399_s3] sm:$0xff] }
 0x575   :  { %4939 = vmatpush3.msra.mxu1 %v5968_v46  ;;  %4913 = vmatprep.subr.mxu0 %v5918_v15 }
 0x576   :  { %4940 = vmatprep.subr.mxu1 %v5956_v45  ;;  %4914 = vmatpush3.msra.mxu0 %v5918_v15 }
 0x577   :  { %4941 = vmatpush3.msra.mxu1 %v5956_v45  ;;  %4915 = vmatprep.subr.mxu0 %v5954_v40 }
 0x578   :  { %4943 = vmatmul.mubr.f32.vlgmr.msra.gmra.mxu1 %v2061_v3  ;;  %4964 = vmatprep.subr.mxu1 %v5905_v1 }
 0x579   :  { %4916 = vmatpush3.msra.mxu0 %v5954_v40  ;;  %4965 = vmatpush3.msra.mxu1 %v5905_v1  ;;  %v2558_v1 = vld [vmem:[%s6399_s3 + $0x10] sm:$0xff] }
 0x57a   :  { %4980 = vmatprep.mubr.f32.mxu1 %v2049_v55  ;;  %4917 = vmatprep.subr.mxu0 %v5942_v21 }
 0x57b   :  { %4966 = vmatprep.subr.mxu1 %v5900_v59  ;;  %4918 = vmatpush3.msra.mxu0 %v5942_v21 }
 0x57c   :  { %4967 = vmatpush3.msra.mxu1 %v5900_v59  ;;  %4919 = vmatprep.subr.mxu0 %v5976_v43  ;;  %v2559_v59 = vld [vmem:[%s6399_s3 + $0x18] sm:$0xff] }
 0x57d   :  { %4968 = vmatprep.subr.mxu1 %v5920_v18  ;;  %4920 = vmatpush3.msra.mxu0 %v5976_v43  ;;  %v6073_v0 = vand.u32 4294901760, %v2559_v59 }
 0x57e   :  { %4969 = vmatpush3.msra.mxu1 %v5920_v18  ;;  %4921 = vmatprep.subr.mxu0 %v5966_v37 }
 0x57f   :  { %4970 = vmatprep.subr.mxu1 %v5910_v7  ;;  %4922 = vmatpush3.msra.mxu0 %v5966_v37  ;;  %v6079_v5 = vsub.f32 %v2559_v59, %v6073_v0 }
 0x580   :  { %4971 = vmatpush3.msra.mxu1 %v5910_v7  ;;  %4924 = vmatmul.mubr.f32.vlgmr.msra.gmra.mxu0 %v2060_v48  ;;  %v6081_v7 = vand.u32 4294901760, %v2558_v1 }
 0x581   :  { %4945 = vmatprep.subr.mxu0 %v5924_v24  ;;  %4972 = vmatprep.subr.mxu1 %v5944_v27  ;;  %v6089_v15 = vand.u32 4294901760, %v6079_v5 }
 0x582   :  { %4946 = vmatpush3.msra.mxu0 %v5924_v24  ;;  %4961 = vmatprep.mubr.f32.mxu0 %v2049_v55  ;;  %v6092_v18 = vsub.f32 %v2558_v1, %v6081_v7 }
 0x583   :  { %4973 = vmatpush3.msra.mxu1 %v5944_v27  ;;  %4947 = vmatprep.subr.mxu0 %v5914_v8  ;;  %v6109_v27 = vand.u32 4294901760, %v2556_v11 }
 0x584   :  { %4974 = vmatprep.subr.mxu1 %v5932_v12  ;;  %4948 = vmatpush3.msra.mxu0 %v5914_v8  ;;  %v2557_v8 = vld [vmem:[%s6399_s3 + $0x8] sm:$0xff] }
 0x585   :  { %4975 = vmatpush3.msra.mxu1 %v5932_v12  ;;  %4949 = vmatprep.subr.mxu0 %v5948_v44  ;;  %v6094_v24 = vand.u32 4294901760, %v2557_v8  ;;  %v2688_v12 = vsub.f32 %v6079_v5, %v6089_v15 }
 0x586   :  { %4976 = vmatprep.subr.mxu1 %v5968_v46  ;;  %4950 = vmatpush3.msra.mxu0 %v5948_v44 }
 0x587   :  { %4977 = vmatpush3.msra.mxu1 %v5968_v46  ;;  %4951 = vmatprep.subr.mxu0 %v5939_v19  ;;  %v6107_v21 = vsub.f32 %v2557_v8, %v6094_v24  ;;  %v2689_v44 = vand.u32 4294901760, %v2688_v12 }
 0x588   :  { %4978 = vmatprep.subr.mxu1 %v5956_v45  ;;  %4952 = vmatpush3.msra.mxu0 %v5939_v19  ;;  %v6104_v19 = vand.u32 4294901760, %v6092_v18 }
 0x589   :  { %4979 = vmatpush3.msra.mxu1 %v5956_v45  ;;  %4953 = vmatprep.subr.mxu0 %v5972_v52  ;;  %v6116_v45 = vand.u32 4294901760, %v6107_v21 }
 0x58a   :  { %4981 = vmatmul.mubr.f32.vlgmr.msra.gmra.mxu1 %v6001_v49  ;;  %4954 = vmatpush3.msra.mxu0 %v5972_v52  ;;  %v2695_v40 = vsub.f32 %v6092_v18, %v6104_v19 }
 0x58b   :  { %4955 = vmatprep.subr.mxu0 %v5962_v36  ;;  %4994 = vmatprep.subr.mxu1 %v2689_v44  ;;  %v2702_v46 = vsub.f32 %v6107_v21, %v6116_v45 }
 0x58c   :  { %4956 = vmatpush3.msra.mxu0 %v5962_v36  ;;  %v6119_v36 = vsub.f32 %v2556_v11, %v6109_v27  ;;  %v2696_v37 = vand.u32 4294901760, %v2695_v40  ;;  %4995 = vmatpush3.msra.mxu1 %v2689_v44 }
 0x58d   :  { %4957 = vmatprep.subr.mxu0 %v5989_v63  ;;  %v2703_v43 = vand.u32 4294901760, %v2702_v46  ;;  %v5203_v46 = vld [vmem:[%s6396_s0 + $0x8] sm:$0xff] }
 0x58e   :  { %4958 = vmatpush3.msra.mxu0 %v5989_v63  ;;  %v6126_v52 = vand.u32 4294901760, %v6119_v36  ;;  %4996 = vmatprep.subr.mxu1 %v2696_v37 }
 0x58f   :  { %4959 = vmatprep.subr.mxu0 %v5984_v58  ;;  %4997 = vmatpush3.msra.mxu1 %v2696_v37 }
 0x590   :  { %4960 = vmatpush3.msra.mxu0 %v5984_v58  ;;  %v2709_v58 = vsub.f32 %v6119_v36, %v6126_v52  ;;  %4998 = vmatprep.subr.mxu1 %v2703_v43 }
 0x591   :  { %4962 = vmatmul.mubr.f32.vlgmr.msra.gmra.mxu0 %v6001_v49  ;;  %4983 = vmatprep.subr.mxu0 %v6073_v0 }
 0x592   :  { %4984 = vmatpush3.msra.mxu0 %v6073_v0  ;;  %v2710_v63 = vand.u32 4294901760, %v2709_v58  ;;  %4999 = vmatpush3.msra.mxu1 %v2703_v43  ;;  %v5204_v58 = vld [vmem:[%s6396_s0] sm:$0xff] }
 0x593   :  { %4985 = vmatprep.subr.mxu0 %v6081_v7 }
 0x594   :  { %4986 = vmatpush3.msra.mxu0 %v6081_v7  ;;  %5000 = vmatprep.subr.mxu1 %v2710_v63 }
 0x595   :  { %4987 = vmatprep.subr.mxu0 %v6094_v24  ;;  %5001 = vmatpush3.msra.mxu1 %v2710_v63 }
 0x596   :  { %4988 = vmatpush3.msra.mxu0 %v6094_v24  ;;  %5016 = vmatprep.subr.mxu1 %v6073_v0 }
 0x597   :  { %4989 = vmatprep.subr.mxu0 %v6109_v27 }
 0x598   :  { %4990 = vmatpush3.msra.mxu0 %v6109_v27 }
 0x599   :  { %5005 = vmatprep.subr.mxu0 %v6079_v5 }
 0x627   :  { %v4906_v38 = vpop.f32.mrf.mxu1 }
 0x629   :  { %v2176_v51 = vpop.f32.mrf.mxu1 }
 0x62f   :  { %v4887_v20 = vpop.f32.mrf.mxu0 }
 0x630   :  { %v2183_v62 = vadd.f32 %v4906_v38, %v4887_v20 }
 0x631   :  { %v2055_v23 = vpop.f32.mrf.mxu0 }
 0x632   :  { %v2177_v47 = vadd.f32 %v2176_v51, %v2055_v23 }
 0x638   :  { %v4944_v16 = vpop.f32.mrf.mxu1 }
 0x63a   :  { %v2358_v30 = vpop.f32.mrf.mxu1 }
 0x640   :  { %v4925_v60 = vpop.f32.mrf.mxu0 }
 0x641   :  { %v2278_v22 = vadd.f32 %v4925_v60, %v2183_v62 }
 0x642   :  { %v2270_v42 = vpop.f32.mrf.mxu0 }
 0x643   :  { %v2271_v26 = vadd.f32 %v2270_v42, %v2177_v47  ;;  %v2367_v39 = vadd.f32 %v4944_v16, %v2278_v22 }
 0x645   :  { %v2359_v2 = vadd.f32 %v2358_v30, %v2271_v26 }
 0x64a   :  { %v4982_v31 = vpop.f32.mrf.mxu1 }
 0x64c   :  { %v2546_v13 = vpop.f32.mrf.mxu1 }
 0x651   :  { %v4963_v56 = vpop.f32.mrf.mxu0 }
 0x652   :  { %v2468_v61 = vadd.f32 %v4963_v56, %v2367_v39  ;;  %v3142_v39 = vld [vmem:[%s6400_s4 + $0x18] sm:$0xff]  ;;  %v3140_v56 = vld [vmem:[%s6400_s4 + $0x8] sm:$0xff] }
 0x653   :  { %v2461_v14 = vpop.f32.mrf.mxu0 }
 0x654   :  { %v2553_v25 = vadd.f32 %v4982_v31, %v2468_v61  ;;  %v2462_v29 = vadd.f32 %v2461_v14, %v2359_v2  ;;  %v3141_v31 = vld [vmem:[%s6400_s4 + $0x10] sm:$0xff]  ;;  %v6198_v61 = vand.u32 4294901760, %v3142_v39  ;;  %v6202_v14 = vand.u32 4294901760, %v3140_v56 }
 0x655   :  { %v6200_v2 = vand.u32 4294901760, %v3141_v31 }
 0x656   :  { %v2569_v17 = vsel %vm36_vm0, %v2553_v25, 0  ;;  %v2547_v28 = vadd.f32 %v2546_v13, %v2462_v29  ;;  %v6205_v25 = vsub.f32 %v3142_v39, %v6198_v61  ;;  %v6211_v13 = vsub.f32 %v3140_v56, %v6202_v14  ;;  %v3684_v56 = vld [vmem:[%s6401_s5] sm:$0xff] }
 0x657   :  { %v2650_v32 = vand.u32 4294901760, %v2569_v17  ;;  %v6208_v29 = vsub.f32 %v3141_v31, %v6200_v2 }
 0x658   :  { %v2566_v33 = vsel %vm36_vm0, %v2547_v28, 0 }
 0x659   :  { %v2651_v34 = vsub.f32 %v2569_v17, %v2650_v32  ;;  %v2640_v35 = vand.u32 4294901760, %v2566_v33  ;;  %v6216_v17 = vand.u32 4294901760, %v6205_v25  ;;  %v6219_v28 = vand.u32 4294901760, %v6208_v29 }
 0x65b   :  { %v2641_v41 = vsub.f32 %v2566_v33, %v2640_v35  ;;  %5002 = vmatprep.mubr.f32.mxu1 %v2640_v35  ;;  %v2652_v49 = vand.u32 4294901760, %v2651_v34  ;;  %v3271_v33 = vsub.f32 %v6205_v25, %v6216_v17 }
 0x65c   :  { %5003 = vmatmul.mubr.f32.vlgmr.msra.gmra.mxu1 %v2650_v32 }
 0x65d   :  { %5017 = vmatpush3.msra.mxu1 %v6073_v0  ;;  %v2642_v54 = vand.u32 4294901760, %v2641_v41  ;;  %v2653_v48 = vsub.f32 %v2651_v34, %v2652_v49 }
 0x65e   :  { %5018 = vmatprep.subr.mxu1 %v6081_v7 }
 0x65f   :  { %5019 = vmatpush3.msra.mxu1 %v6081_v7  ;;  %5024 = vmatprep.mubr.f32.mxu1 %v2642_v54  ;;  %v2643_v55 = vsub.f32 %v2641_v41, %v2642_v54  ;;  %v2654_v3 = vand.u32 4294901760, %v2653_v48  ;;  %v3139_v54 = vld [vmem:[%s6400_s4] sm:$0xff] }
 0x660   :  { %5020 = vmatprep.subr.mxu1 %v6094_v24 }
 0x661   :  { %5021 = vmatpush3.msra.mxu1 %v6094_v24  ;;  %v2644_v50 = vand.u32 4294901760, %v2643_v55  ;;  %v6237_v55 = vand.u32 4294901760, %v3139_v54 }
 0x662   :  { %5022 = vmatprep.subr.mxu1 %v6109_v27 }
 0x663   :  { %5023 = vmatpush3.msra.mxu1 %v6109_v27  ;;  %4991 = vmatprep.mubr.f32.mxu0 %v2644_v50  ;;  %v6240_v50 = vsub.f32 %v3139_v54, %v6237_v55 }
 0x664   :  { %5025 = vmatmul.mubr.f32.vlgmr.msra.gmra.mxu1 %v2652_v49  ;;  %5038 = vmatprep.subr.mxu1 %v6073_v0 }
 0x665   :  { %4992 = vmatmul.mubr.f32.vlgmr.msra.gmra.mxu0 %v2654_v3  ;;  %5039 = vmatpush3.msra.mxu1 %v6073_v0  ;;  %v6245_v3 = vand.u32 4294901760, %v6240_v50 }
 0x666   :  { %5006 = vmatpush3.msra.mxu0 %v6079_v5  ;;  %5046 = vmatprep.mubr.f32.mxu1 %v2640_v35 }
 0x667   :  { %5007 = vmatprep.subr.mxu0 %v6092_v18  ;;  %5013 = vmatprep.mubr.f32.mxu0 %v2641_v41  ;;  %v3272_v41 = vand.u32 4294901760, %v3271_v33 }
 0x668   :  { %5040 = vmatprep.subr.mxu1 %v6081_v7  ;;  %5008 = vmatpush3.msra.mxu0 %v6092_v18 }
 0x669   :  { %5041 = vmatpush3.msra.mxu1 %v6081_v7  ;;  %5009 = vmatprep.subr.mxu0 %v6107_v21 }
 0x66a   :  { %5042 = vmatprep.subr.mxu1 %v6094_v24  ;;  %5010 = vmatpush3.msra.mxu0 %v6107_v21 }
 0x66b   :  { %5043 = vmatpush3.msra.mxu1 %v6094_v24  ;;  %5011 = vmatprep.subr.mxu0 %v6119_v36 }
 0x66c   :  { %5044 = vmatprep.subr.mxu1 %v6109_v27  ;;  %5012 = vmatpush3.msra.mxu0 %v6119_v36 }
 0x66d   :  { %5045 = vmatpush3.msra.mxu1 %v6109_v27  ;;  %5014 = vmatmul.mubr.f32.vlgmr.msra.gmra.mxu0 %v2651_v34  ;;  %v3278_v34 = vsub.f32 %v6208_v29, %v6219_v28 }
 0x66e   :  { %5027 = vmatprep.subr.mxu0 %v6089_v15  ;;  %5047 = vmatmul.mubr.f32.vlgmr.msra.gmra.mxu1 %v2650_v32 }
 0x66f   :  { %5028 = vmatpush3.msra.mxu0 %v6089_v15  ;;  %5035 = vmatprep.mubr.f32.mxu0 %v2640_v35  ;;  %v3279_v49 = vand.u32 4294901760, %v3278_v34 }
 0x670   :  { %5029 = vmatprep.subr.mxu0 %v6104_v19  ;;  %5060 = vmatprep.subr.mxu1 %v3272_v41 }
 0x671   :  { %5030 = vmatpush3.msra.mxu0 %v6104_v19  ;;  %5061 = vmatpush3.msra.mxu1 %v3272_v41 }
 0x672   :  { %5031 = vmatprep.subr.mxu0 %v6116_v45  ;;  %5062 = vmatprep.subr.mxu1 %v3279_v49 }
 0x673   :  { %5032 = vmatpush3.msra.mxu0 %v6116_v45  ;;  %5063 = vmatpush3.msra.mxu1 %v3279_v49 }
 0x674   :  { %5033 = vmatprep.subr.mxu0 %v6126_v52 }
 0x675   :  { %5034 = vmatpush3.msra.mxu0 %v6126_v52 }
 0x676   :  { %5036 = vmatmul.mubr.f32.vlgmr.msra.gmra.mxu0 %v2650_v32  ;;  %5049 = vmatprep.subr.mxu0 %v6198_v61  ;;  %v6222_v32 = vand.u32 4294901760, %v6211_v13 }
 0x677   :  { %5050 = vmatpush3.msra.mxu0 %v6198_v61 }
 0x678   :  { %5051 = vmatprep.subr.mxu0 %v6200_v2  ;;  %v3285_v35 = vsub.f32 %v6211_v13, %v6222_v32 }
 0x679   :  { %5052 = vmatpush3.msra.mxu0 %v6200_v2 }
 0x67a   :  { %5053 = vmatprep.subr.mxu0 %v6202_v14  ;;  %v3286_v48 = vand.u32 4294901760, %v3285_v35 }
 0x67b   :  { %5054 = vmatpush3.msra.mxu0 %v6202_v14 }
 0x67c   :  { %5055 = vmatprep.subr.mxu0 %v6237_v55  ;;  %5064 = vmatprep.subr.mxu1 %v3286_v48 }
 0x67d   :  { %5056 = vmatpush3.msra.mxu0 %v6237_v55  ;;  %5065 = vmatpush3.msra.mxu1 %v3286_v48 }
 0x67e   :  { %5071 = vmatprep.subr.mxu0 %v6205_v25 }
 0x71c   :  { %v5004_v4 = vpop.f32.mrf.mxu1 }
 0x71e   :  { %v2747_v1 = vpop.f32.mrf.mxu1 }
 0x724   :  { %v5026_v7 = vpop.f32.mrf.mxu1 }
 0x725   :  { %v4993_v10 = vpop.f32.mrf.mxu0 }
 0x726   :  { %v2657_v6 = vadd.f32 %v4993_v10, %v4248_v57  ;;  %v2917_v11 = vpop.f32.mrf.mxu1  ;;  %v3292_v10 = vsub.f32 %v6240_v50, %v6245_v3 }
 0x727   :  { %v2646_v9 = vpop.f32.mrf.mxu0 }
 0x728   :  { %v2647_v59 = vadd.f32 %v4248_v57, %v2646_v9  ;;  %v2754_v5 = vadd.f32 %v5004_v4, %v2657_v6  ;;  %v3293_v57 = vand.u32 4294901760, %v3292_v10 }
 0x72a   :  { %v2748_v18 = vadd.f32 %v2747_v1, %v2647_v59  ;;  %5066 = vmatprep.subr.mxu1 %v3293_v57 }
 0x72b   :  { %5067 = vmatpush3.msra.mxu1 %v3293_v57 }
 0x72c   :  { %5082 = vmatprep.subr.mxu1 %v6198_v61 }
 0x72d   :  { %v5015_v0 = vpop.f32.mrf.mxu0 }
 0x72e   :  { %v2841_v15 = vadd.f32 %v5015_v0, %v2754_v5  ;;  %v5048_v19 = vpop.f32.mrf.mxu1  ;;  %v3129_v5 = vsub.s32 2, %v5412_v53 }
 0x72f   :  { %v2833_v8 = vpop.f32.mrf.mxu0 }
 0x730   :  { %v2834_v24 = vadd.f32 %v2833_v8, %v2748_v18  ;;  %v2926_v12 = vadd.f32 %v5026_v7, %v2841_v15  ;;  %v3089_v37 = vpop.f32.mrf.mxu1  ;;  %v3135_v7 = vsub.s32 3, %v5412_v53  ;;  %v5205_v8 = vld [vmem:[%s6397_s1] sm:$0xf] }
 0x731   :  { %v3130_v15 = vrot.slane %v5205_v8, %v3129_v5 }
 0x732   :  { %v2918_v44 = vadd.f32 %v2917_v11, %v2834_v24  ;;  %v3136_v11 = vrot.slane %v5205_v8, %v3135_v7 }
 0x736   :  { %v5037_v21 = vpop.f32.mrf.mxu0 }
 0x737   :  { %v3015_v27 = vadd.f32 %v5037_v21, %v2926_v12 }
 0x738   :  { %v3008_v40 = vpop.f32.mrf.mxu0 }
 0x739   :  { %v3096_v45 = vadd.f32 %v5048_v19, %v3015_v27  ;;  %v3009_v36 = vadd.f32 %v3008_v40, %v2918_v44 }
 0x73b   :  { %v6170_v52 = vadd.f32 %v5203_v46, %v3096_v45  ;;  %v3090_v43 = vadd.f32 %v3089_v37, %v3009_v36 }
 0x73d   :  { %v6175_v63 = vadd.f32 %v5204_v58, %v3090_v43  ;;  %v3104_v20 = vsel %vm36_vm0, %v6170_v52, 0.0 }
 0x73e   :  { %3105 = vadd.xlane.f32.xlu1 %v3104_v20 }
 0x73f   :  { %v3101_v38 = vsel %vm36_vm0, %v6175_v63, 0.0 }
 0x740   :  { %3102 = vadd.xlane.f32.xlu0 %v3101_v38 }
 0x7c7   :  { %v3106_v23 = vpop.xlane.xlu1 %3105 }
 0x7c8   :  { %v3108_v60 = vmul.f32 0.03125, %v3106_v23 }
 0x7c9   :  { %v3103_v51 = vpop.xlane.xlu0 %3102 }
 0x7ca   :  { %v3107_v62 = vmul.f32 0.03125, %v3103_v51  ;;  %v6182_v16 = vsub.f32 %v6170_v52, %v3108_v60 }
 0x7cc   :  { %v3109_v42 = vsub.f32 %v6175_v63, %v3107_v62  ;;  %v3112_v26 = vmul.f32 %v6182_v16, %v6182_v16  ;;  %v3687_v62 = vld [vmem:[%s6401_s5 + $0x18] sm:$0xff] }
 0x7ce   :  { %v3111_v47 = vmul.f32 %v3109_v42, %v3109_v42  ;;  %v3116_v30 = vsel %vm36_vm0, %v3112_v26, 0.0  ;;  %v3685_v26 = vld [vmem:[%s6401_s5 + $0x8] sm:$0xff] }
 0x7cf   :  { %v6313_v31 = vand.u32 4294901760, %v3685_v26 }
 0x7d0   :  { %v3113_v22 = vsel %vm36_vm0, %v3111_v47, 0.0 }
 0x7d1   :  { %3114 = vadd.xlane.f32.xlu0 %v3113_v22 }
 0x7d5   :  { %3117 = vadd.xlane.f32.xlu0 %v3116_v30 }
 0x85a   :  { %v3115_v4 = vpop.xlane.xlu0 %3114 }
 0x85b   :  { %v3119_v9 = vmul.f32 0.03125, %v3115_v4 }
 0x85d   :  { %v3121_v6 = vadd.f32 1e-05, %v3119_v9 }
 0x85e   :  { %v3118_v59 = vpop.xlane.xlu0 %3117 }
 0x85f   :  { %5199 = vrsqrt.f32 %v3121_v6  ;;  %v3120_v0 = vmul.f32 0.03125, %v3118_v59 }
 0x861   :  { %v3122_v1 = vadd.f32 1e-05, %v3120_v0 }
 0x863   :  { %5201 = vrsqrt.f32 %v3122_v1 }
 0x86c   :  { %v5200_v18 = vpop.eup %5199 }
 0x86d   :  { %v3125_v24 = vmul.f32 %v5200_v18, %v3109_v42  ;;  %v3686_v42 = vld [vmem:[%s6401_s5 + $0x10] sm:$0xff] }
 0x86e   :  { %v6300_v22 = vand.u32 4294901760, %v3686_v42 }
 0x86f   :  { %v3131_v12 = vmul.f32 %v3130_v15, %v3125_v24 }
 0x870   :  { %v5202_v19 = vpop.eup %5201  ;;  %v6311_v39 = vsub.f32 %v3686_v42, %v6300_v22  ;;  %v4250_v42 = vld [vmem:[%s6401_s5 + $0x20] ss:$0 sm:$0xff]  ;;  %s5231_s5 = smov [#allocation2]  }
 0x871   :  { %v3137_v21 = vadd.f32 %v3136_v11, %v3131_v12  ;;  %v3126_v27 = vmul.f32 %v5202_v19, %v6182_v16  ;;  %v6292_v16 = vand.u32 4294901760, %v3687_v62  ;;  %s4236_s23 = sshll.u32 %s5231_s5, 4  ;;  %s4237_s23 = int_to_ptr.vmem [resolvable:$true] %s4236_s23 }
 0x872   :  { %s5206_s7 = scalar_lea.vmem %s4237_s23, 256  ;;  %p5211_p1 = scmp.lt.s32.totalorder %s4237_s23, %s4237_s23 }
 0x873   :  { %v3149_v44 = vsel %vm36_vm0, %v3137_v21, 0  ;;  %v3132_v40 = vmul.f32 %v3130_v15, %v3126_v27  ;;  %v6298_v47 = vsub.f32 %v3687_v62, %v6292_v16  ;;  %p5207_p0 = scmp.ne.s32.totalorder %s4237_s23, %s5206_s7  ;;  %p5212_p2 = scmp.lt.s32.totalorder %s5206_s7, %s5206_s7 }
 0x874   :  { %v3223_v45 = vand.u32 4294901760, %v3149_v44 }
 0x875   :  { %v3138_v36 = vadd.f32 %v3136_v11, %v3132_v40  ;;  %v6308_v30 = vand.u32 4294901760, %v6298_v47  ;;  %p5213_p3 = por %p5212_p2, %p5211_p1 }
 0x876   :  { %5068 = vmatprep.mubr.f32.mxu1 %v3223_v45  ;;  %v3224_v53 = vsub.f32 %v3149_v44, %v3223_v45 }
 0x877   :  { %v3152_v37 = vsel %vm36_vm0, %v3138_v36, 0  ;;  %p5214_p4 = pnand %p5213_p3, %p5207_p0 }
 0x878   :  { %v3233_v46 = vand.u32 4294901760, %v3152_v37  ;;  %v3225_v43 = vand.u32 4294901760, %v3224_v53 }
 0x87a   :  { %v3234_v58 = vsub.f32 %v3152_v37, %v3233_v46  ;;  %5069 = vmatmul.mubr.f32.vlgmr.msra.gmra.mxu1 %v3233_v46  ;;  %v3226_v20 = vsub.f32 %v3224_v53, %v3225_v43 }
 0x87b   :  { %5083 = vmatpush3.msra.mxu1 %v6198_v61  ;;  %5090 = vmatprep.mubr.f32.mxu1 %v3225_v43 }
 0x87c   :  { %5084 = vmatprep.subr.mxu1 %v6200_v2  ;;  %v3227_v38 = vand.u32 4294901760, %v3226_v20  ;;  %v3235_v23 = vand.u32 4294901760, %v3234_v58 }
 0x87d   :  { %5085 = vmatpush3.msra.mxu1 %v6200_v2 }
 0x87e   :  { %5086 = vmatprep.subr.mxu1 %v6202_v14  ;;  %5057 = vmatprep.mubr.f32.mxu0 %v3227_v38  ;;  %v3236_v60 = vsub.f32 %v3234_v58, %v3235_v23 }
 0x87f   :  { %5087 = vmatpush3.msra.mxu1 %v6202_v14 }
 0x880   :  { %5088 = vmatprep.subr.mxu1 %v6237_v55  ;;  %v3237_v51 = vand.u32 4294901760, %v3236_v60 }
 0x881   :  { %5089 = vmatpush3.msra.mxu1 %v6237_v55 }
 0x882   :  { %5091 = vmatmul.mubr.f32.vlgmr.msra.gmra.mxu1 %v3235_v23  ;;  %5104 = vmatprep.subr.mxu1 %v6198_v61 }
 0x883   :  { %5058 = vmatmul.mubr.f32.vlgmr.msra.gmra.mxu0 %v3237_v51  ;;  %5105 = vmatpush3.msra.mxu1 %v6198_v61  ;;  %v3816_v61 = vsub.f32 %v6298_v47, %v6308_v30 }
 0x884   :  { %5072 = vmatpush3.msra.mxu0 %v6205_v25  ;;  %5112 = vmatprep.mubr.f32.mxu1 %v3223_v45  ;;  %v6328_v25 = vand.u32 4294901760, %v3684_v56 }
 0x885   :  { %5073 = vmatprep.subr.mxu0 %v6208_v29  ;;  %5079 = vmatprep.mubr.f32.mxu0 %v3224_v53 }
 0x886   :  { %5106 = vmatprep.subr.mxu1 %v6200_v2  ;;  %5074 = vmatpush3.msra.mxu0 %v6208_v29  ;;  %v3817_v29 = vand.u32 4294901760, %v3816_v61 }
 0x887   :  { %5107 = vmatpush3.msra.mxu1 %v6200_v2  ;;  %5075 = vmatprep.subr.mxu0 %v6211_v13  ;;  %v6323_v2 = vand.u32 4294901760, %v6311_v39 }
 0x888   :  { %5108 = vmatprep.subr.mxu1 %v6202_v14  ;;  %5076 = vmatpush3.msra.mxu0 %v6211_v13 }
 0x889   :  { %5109 = vmatpush3.msra.mxu1 %v6202_v14  ;;  %5077 = vmatprep.subr.mxu0 %v6240_v50  ;;  %v6326_v14 = vsub.f32 %v3685_v26, %v6313_v31  ;;  %v3823_v13 = vsub.f32 %v6311_v39, %v6323_v2 }
 0x88a   :  { %5110 = vmatprep.subr.mxu1 %v6237_v55  ;;  %5078 = vmatpush3.msra.mxu0 %v6240_v50 }
 0x88b   :  { %5111 = vmatpush3.msra.mxu1 %v6237_v55  ;;  %5080 = vmatmul.mubr.f32.vlgmr.msra.gmra.mxu0 %v3234_v58  ;;  %v4249_v55 = vld [vmem:[%s6400_s4 + $0x20] ss:$0 sm:$0xff] }
 0x88c   :  { %5093 = vmatprep.subr.mxu0 %v6216_v17  ;;  %5113 = vmatmul.mubr.f32.vlgmr.msra.gmra.mxu1 %v3233_v46 }
 0x88d   :  { %5094 = vmatpush3.msra.mxu0 %v6216_v17  ;;  %5101 = vmatprep.mubr.f32.mxu0 %v3223_v45  ;;  %v6335_v17 = vand.u32 4294901760, %v6326_v14 }
 0x88e   :  { %5095 = vmatprep.subr.mxu0 %v6219_v28  ;;  %5126 = vmatprep.subr.mxu1 %v3817_v29 }
 0x88f   :  { %5096 = vmatpush3.msra.mxu0 %v6219_v28  ;;  %v6338_v28 = vsub.f32 %v3684_v56, %v6328_v25  ;;  %v3830_v33 = vsub.f32 %v6326_v14, %v6335_v17  ;;  %5127 = vmatpush3.msra.mxu1 %v3817_v29 }
 0x890   :  { %5097 = vmatprep.subr.mxu0 %v6222_v32 }
 0x891   :  { %5098 = vmatpush3.msra.mxu0 %v6222_v32  ;;  %v3824_v32 = vand.u32 4294901760, %v3823_v13  ;;  %v6345_v34 = vand.u32 4294901760, %v6338_v28  ;;  %v3831_v35 = vand.u32 4294901760, %v3830_v33 }
 0x892   :  { %5099 = vmatprep.subr.mxu0 %v6245_v3 }
 0x893   :  { %5100 = vmatpush3.msra.mxu0 %v6245_v3  ;;  %5128 = vmatprep.subr.mxu1 %v3824_v32  ;;  %v3837_v41 = vsub.f32 %v6338_v28, %v6345_v34 }
 0x894   :  { %5102 = vmatmul.mubr.f32.vlgmr.msra.gmra.mxu0 %v3233_v46  ;;  %5115 = vmatprep.subr.mxu0 %v6292_v16 }
 0x895   :  { %5116 = vmatpush3.msra.mxu0 %v6292_v16  ;;  %5129 = vmatpush3.msra.mxu1 %v3824_v32  ;;  %v3838_v49 = vand.u32 4294901760, %v3837_v41 }
 0x896   :  { %5117 = vmatprep.subr.mxu0 %v6300_v22  ;;  %5130 = vmatprep.subr.mxu1 %v3831_v35 }
 0x897   :  { %5118 = vmatpush3.msra.mxu0 %v6300_v22  ;;  %5131 = vmatpush3.msra.mxu1 %v3831_v35 }
 0x898   :  { %5119 = vmatprep.subr.mxu0 %v6313_v31  ;;  %5132 = vmatprep.subr.mxu1 %v3838_v49 }
 0x899   :  { %5120 = vmatpush3.msra.mxu0 %v6313_v31  ;;  %5133 = vmatpush3.msra.mxu1 %v3838_v49 }
 0x89a   :  { %5121 = vmatprep.subr.mxu0 %v6328_v25  ;;  %5148 = vmatprep.subr.mxu1 %v6292_v16 }
 0x89b   :  { %5122 = vmatpush3.msra.mxu0 %v6328_v25 }
 0x89c   :  { %5137 = vmatprep.subr.mxu0 %v6298_v47 }
 0x93a   :  { %v5070_v48 = vpop.f32.mrf.mxu1 }
 0x93c   :  { %v3330_v4 = vpop.f32.mrf.mxu1 }
 0x942   :  { %v5092_v6 = vpop.f32.mrf.mxu1 }
 0x943   :  { %v5059_v54 = vpop.f32.mrf.mxu0 }
 0x944   :  { %v3240_v3 = vadd.f32 %v5059_v54, %v4249_v55  ;;  %v3500_v7 = vpop.f32.mrf.mxu1 }
 0x945   :  { %v3229_v50 = vpop.f32.mrf.mxu0 }
 0x946   :  { %v3230_v10 = vadd.f32 %v4249_v55, %v3229_v50  ;;  %v3337_v9 = vadd.f32 %v5070_v48, %v3240_v3 }
 0x948   :  { %v3331_v1 = vadd.f32 %v3330_v4, %v3230_v10 }
 0x94b   :  { %v5081_v57 = vpop.f32.mrf.mxu0 }
 0x94c   :  { %v3424_v0 = vadd.f32 %v5081_v57, %v3337_v9  ;;  %v5114_v15 = vpop.f32.mrf.mxu1 }
 0x94d   :  { %v3416_v59 = vpop.f32.mrf.mxu0 }
 0x94e   :  { %v3417_v5 = vadd.f32 %v3416_v59, %v3331_v1  ;;  %v3509_v8 = vadd.f32 %v5092_v6, %v3424_v0  ;;  %v3672_v27 = vpop.f32.mrf.mxu1 }
 0x950   :  { %v3501_v11 = vadd.f32 %v3500_v7, %v3417_v5 }
 0x954   :  { %v5103_v18 = vpop.f32.mrf.mxu0 }
 0x955   :  { %v3598_v24 = vadd.f32 %v5103_v18, %v3509_v8 }
 0x956   :  { %v3591_v12 = vpop.f32.mrf.mxu0 }
 0x957   :  { %v3679_v19 = vadd.f32 %v5114_v15, %v3598_v24  ;;  %v3592_v21 = vadd.f32 %v3591_v12, %v3501_v11 }
 0x959   :  { %v3683_v44 = vmax.f32 %v3679_v19, 0.0  ;;  %v3673_v40 = vadd.f32 %v3672_v27, %v3592_v21 }
 0x95b   :  { %v3697_v45 = vsel %vm36_vm0, %v3683_v44, 0  ;;  %v3682_v36 = vmax.f32 %v3673_v40, 0.0 }
 0x95c   :  { %v3778_v53 = vand.u32 4294901760, %v3697_v45 }
 0x95d   :  { %v3694_v37 = vsel %vm36_vm0, %v3682_v36, 0 }
 0x95e   :  { %v3779_v46 = vsub.f32 %v3697_v45, %v3778_v53  ;;  %v3768_v43 = vand.u32 4294901760, %v3694_v37 }
 0x960   :  { %v3769_v58 = vsub.f32 %v3694_v37, %v3768_v43  ;;  %5134 = vmatprep.mubr.f32.mxu1 %v3768_v43  ;;  %v3780_v20 = vand.u32 4294901760, %v3779_v46 }
 0x961   :  { %5135 = vmatmul.mubr.f32.vlgmr.msra.gmra.mxu1 %v3778_v53 }
 0x962   :  { %5149 = vmatpush3.msra.mxu1 %v6292_v16  ;;  %v3770_v38 = vand.u32 4294901760, %v3769_v58  ;;  %v3781_v60 = vsub.f32 %v3779_v46, %v3780_v20 }
 0x963   :  { %5150 = vmatprep.subr.mxu1 %v6300_v22 }
 0x964   :  { %5151 = vmatpush3.msra.mxu1 %v6300_v22  ;;  %5156 = vmatprep.mubr.f32.mxu1 %v3770_v38  ;;  %v3771_v23 = vsub.f32 %v3769_v58, %v3770_v38  ;;  %v3782_v62 = vand.u32 4294901760, %v3781_v60 }
 0x965   :  { %5152 = vmatprep.subr.mxu1 %v6313_v31 }
 0x966   :  { %5153 = vmatpush3.msra.mxu1 %v6313_v31  ;;  %v3772_v51 = vand.u32 4294901760, %v3771_v23 }
 0x967   :  { %5154 = vmatprep.subr.mxu1 %v6328_v25 }
 0x968   :  { %5155 = vmatpush3.msra.mxu1 %v6328_v25  ;;  %5123 = vmatprep.mubr.f32.mxu0 %v3772_v51 }
 0x969   :  { %5157 = vmatmul.mubr.f32.vlgmr.msra.gmra.mxu1 %v3780_v20  ;;  %5170 = vmatprep.subr.mxu1 %v6292_v16 }
 0x96a   :  { %5124 = vmatmul.mubr.f32.vlgmr.msra.gmra.mxu0 %v3782_v62  ;;  %5171 = vmatpush3.msra.mxu1 %v6292_v16 }
 0x96b   :  { %5138 = vmatpush3.msra.mxu0 %v6298_v47  ;;  %5178 = vmatprep.mubr.f32.mxu1 %v3768_v43 }
 0x96c   :  { %5139 = vmatprep.subr.mxu0 %v6311_v39  ;;  %5145 = vmatprep.mubr.f32.mxu0 %v3769_v58 }
 0x96d   :  { %5172 = vmatprep.subr.mxu1 %v6300_v22  ;;  %5140 = vmatpush3.msra.mxu0 %v6311_v39 }
 0x96e   :  { %5173 = vmatpush3.msra.mxu1 %v6300_v22  ;;  %5141 = vmatprep.subr.mxu0 %v6326_v14 }
 0x96f   :  { %5174 = vmatprep.subr.mxu1 %v6313_v31  ;;  %5142 = vmatpush3.msra.mxu0 %v6326_v14 }
 0x970   :  { %5175 = vmatpush3.msra.mxu1 %v6313_v31  ;;  %5143 = vmatprep.subr.mxu0 %v6338_v28 }
 0x971   :  { %5176 = vmatprep.subr.mxu1 %v6328_v25  ;;  %5144 = vmatpush3.msra.mxu0 %v6338_v28 }
 0x972   :  { %5177 = vmatpush3.msra.mxu1 %v6328_v25  ;;  %5146 = vmatmul.mubr.f32.vlgmr.msra.gmra.mxu0 %v3779_v46 }
 0x973   :  { %5159 = vmatprep.subr.mxu0 %v6308_v30  ;;  %5179 = vmatmul.mubr.f32.vlgmr.msra.gmra.mxu1 %v3778_v53 }
 0x974   :  { %5160 = vmatpush3.msra.mxu0 %v6308_v30  ;;  %5167 = vmatprep.mubr.f32.mxu0 %v3768_v43 }
 0x975   :  { %5161 = vmatprep.subr.mxu0 %v6323_v2 }
 0x976   :  { %5162 = vmatpush3.msra.mxu0 %v6323_v2 }
 0x977   :  { %5163 = vmatprep.subr.mxu0 %v6335_v17 }
 0x978   :  { %5164 = vmatpush3.msra.mxu0 %v6335_v17 }
 0x979   :  { %5165 = vmatprep.subr.mxu0 %v6345_v34 }
 0x97a   :  { %5166 = vmatpush3.msra.mxu0 %v6345_v34 }
 0x97b   :  { %5168 = vmatmul.mubr.f32.vlgmr.msra.gmra.mxu0 %v3778_v53 }
 0xa21   :  { %v5136_v47 = vpop.f32.mrf.mxu1 }
 0xa23   :  { %v3875_v31 = vpop.f32.mrf.mxu1 }
 0xa29   :  { %v5158_v61 = vpop.f32.mrf.mxu1 }
 0xa2a   :  { %v5125_v16 = vpop.f32.mrf.mxu0 }
 0xa2b   :  { %v3785_v26 = vadd.f32 %v5125_v16, %v4250_v42  ;;  %v4045_v13 = vpop.f32.mrf.mxu1 }
 0xa2c   :  { %v3774_v22 = vpop.f32.mrf.mxu0 }
 0xa2d   :  { %v3775_v30 = vadd.f32 %v4250_v42, %v3774_v22  ;;  %v3882_v56 = vadd.f32 %v5136_v47, %v3785_v26 }
 0xa2f   :  { %v3876_v25 = vadd.f32 %v3875_v31, %v3775_v30 }
 0xa32   :  { %v5147_v39 = vpop.f32.mrf.mxu0 }
 0xa33   :  { %v3969_v14 = vadd.f32 %v5147_v39, %v3882_v56  ;;  %v5180_v28 = vpop.f32.mrf.mxu1 }
 0xa34   :  { %v3961_v2 = vpop.f32.mrf.mxu0 }
 0xa35   :  { %v3962_v29 = vadd.f32 %v3961_v2, %v3876_v25  ;;  %v4054_v17 = vadd.f32 %v5158_v61, %v3969_v14  ;;  %v4217_v54 = vpop.f32.mrf.mxu1 }
 0xa37   :  { %v4046_v34 = vadd.f32 %v4045_v13, %v3962_v29 }
 0xa3b   :  { %v5169_v32 = vpop.f32.mrf.mxu0 }
 0xa3c   :  { %v4143_v33 = vadd.f32 %v5169_v32, %v4054_v17 }
 0xa3d   :  { %v4136_v35 = vpop.f32.mrf.mxu0 }
 0xa3e   :  { %v4224_v41 = vadd.f32 %v5180_v28, %v4143_v33  ;;  %v4137_v49 = vadd.f32 %v4136_v35, %v4046_v34 }
 0xa40   :  { %v4228_v55 = vadd.f32 %v4224_v41, %v6170_v52  ;;  %v4218_v48 = vadd.f32 %v4217_v54, %v4137_v49 }
 0xa42   :  { %4230 = vst.msk [vmem:[#allocation2 + $0x8] sm:$0xff] %vm36_vm0, %v4228_v55  ;;  %v4227_v50 = vadd.f32 %v4218_v48, %v6175_v63 }
 0xa44   :  { %4229 = vst.msk [vmem:[#allocation2] sm:$0xff] %vm36_vm0, %v4227_v50 }
 0xa45   :  { %5217 = shalt.err (!%p5214_p4)
}
 0xa46   :  { %s5232_s24 = smov 128   ;;  %s5233_s3 = smov 8  }
 0xa47   :  { %4242 = dma.vmem_to_hbm [thread:$0]  %s4237_s23, 256, %s6405_s9, [#allocation3], %s5232_s24, %s5232_s24, %s5233_s3  }
 0xa48   :  { %5226 = dma.done.wait [#allocation3], 256  }
 0xa49   :  { %5227 = vsyncadd [#allocation3], 4294967040 }
 0xa4a   :  { %4246 = vsyncpa [#allocation3], 1 }

</bundles_post_ra>
